<compile_context>
chip_gen: v6e
topology: v6e:2x2x1
jax: 0.10.0
libtpu: 0.0.40
codegen_flags: <defaults>
</compile_context>

<pallas_src>
import functools

import numpy as np

import jax
import jax.numpy as jnp
from jax import lax
from jax.experimental import pallas as pl
from jax.experimental.pallas import tpu as pltpu


LANES = 128
_VMEM = pl.BlockSpec(memory_space=pltpu.MemorySpace.VMEM)


def _round_up(x, m):
    return ((x + m - 1) // m) * m


# ----------------------------------------------------------------------------
# The single fused Pallas kernel
# ----------------------------------------------------------------------------
def _dueling_dqn_kernel(cols1_ref, slab_ref, out_ref, *,
                        off, batch, n_actions, rows1, rows2, rows3,
                        taps2, taps3, c_in, oc1, oc2, oc3, hidden):
    f32, bf16 = jnp.float32, jnp.bfloat16

    def mm(a, b):
        return jnp.dot(a, b, preferred_element_type=f32)

    def row(o, width):                       # one bias row -> (1, width)
        return slab_ref[o:o + 1, 0:width]

    # ---- conv1: one GEMM over the pre-gathered 8x8 patches -----------------
    w1 = slab_ref[off["w1"]:off["w1"] + c_in * 64, 0:oc1]          # (C*64, 32)
    h1 = jnp.maximum(mm(cols1_ref[...], w1) + row(off["b1"], oc1), 0.0)
    h1 = h1.astype(bf16)                                           # (rows1, 32)

    # ---- conv2: spatial gather (one GEMM) + batched per-tap GEMMs ----------
    g2 = slab_ref[off["g2"]:off["g2"] + taps2 * rows2, 0:rows1]    # (16*24, 128)
    cols2 = mm(g2, h1).reshape(taps2, rows2, oc1).astype(bf16)     # (16, 24, 32)
    w2 = slab_ref[off["w2"]:off["w2"] + taps2 * oc1, 0:oc2]
    w2 = w2.reshape(taps2, oc1, oc2)                               # (16, 32, 64)
    acc2 = jnp.sum(jnp.einsum("trc,tco->tro", cols2, w2,
                              preferred_element_type=f32), axis=0)
    h2 = jnp.maximum(acc2 + row(off["b2"], oc2), 0.0).astype(bf16)  # (24, 64)

    # ---- conv3: same scheme (3x3 kernel on a 3x3 map -> 1x1 output) --------
    g3 = slab_ref[off["g3"]:off["g3"] + taps3 * rows3, 0:rows2]    # (72, 24)
    cols3 = mm(g3, h2).reshape(taps3, rows3, oc2).astype(bf16)     # (9, 8, 64)
    w3 = slab_ref[off["w3"]:off["w3"] + taps3 * oc2, 0:oc3]
    w3 = w3.reshape(taps3, oc2, oc3)                               # (9, 64, 64)
    acc3 = jnp.sum(jnp.einsum("trc,tco->tro", cols3, w3,
                              preferred_element_type=f32), axis=0)
    h3 = jnp.maximum(acc3 + row(off["b3"], oc3), 0.0).astype(bf16)  # (8, 64)

    # ---- fc: feat(=64) -> hidden(=512), weight stored as 128-lane blocks ---
    nblk = hidden // LANES
    wfc = jnp.concatenate(
        [slab_ref[off["wfc"] + j * oc3: off["wfc"] + (j + 1) * oc3, :]
         for j in range(nblk)], axis=1)                            # (64, 512)
    bfc = jnp.concatenate(
        [row(off["bfc"] + 16 * j, LANES) for j in range(nblk)], axis=1)  # (1,512)
    h4 = jnp.maximum(mm(h3, wfc) + bfc, 0.0).astype(bf16)          # (8, 512)

    # ---- fused dueling head: lanes 0..n-1 = advantage, lane n = value ------
    wh = slab_ref[off["wh"]:off["wh"] + hidden, :]                 # (512, 128)
    va = mm(h4, wh) + row(off["bh"], LANES)                        # (8, 128) f32

    # advantage.mean(): global mean over the real (batch x n_actions) block.
    ri = lax.broadcasted_iota(jnp.int32, va.shape, 0)
    ci = lax.broadcasted_iota(jnp.int32, va.shape, 1)
    adv_mask = (ri < batch) & (ci < n_actions)
    adv_mean = jnp.sum(jnp.where(adv_mask, va, 0.0)) * (1.0 / (batch * n_actions))

    value = va[:, n_actions:n_actions + 1]                         # (8, 1)
    out_ref[...] = (value + va - adv_mean).astype(out_ref.dtype)


# ----------------------------------------------------------------------------
# Parameter init (PyTorch-equivalent layouts)
# ----------------------------------------------------------------------------
def init_params(key, input_shape, n_actions):
    C = input_shape[0]

    def lin_init(k, fan_in, shape):
        return jax.random.normal(k, shape, jnp.float32) / jnp.sqrt(fan_in)

    ks = jax.random.split(key, 12)
    p = {
        "w1": lin_init(ks[0], C * 8 * 8, (32, C, 8, 8)),
        "b1": lin_init(ks[1], C * 8 * 8, (32,)),
        "w2": lin_init(ks[2], 32 * 4 * 4, (64, 32, 4, 4)),
        "b2": lin_init(ks[3], 32 * 4 * 4, (64,)),
        "w3": lin_init(ks[4], 64 * 3 * 3, (64, 64, 3, 3)),
        "b3": lin_init(ks[5], 64 * 3 * 3, (64,)),
    }
    H = input_shape[1]
    h1 = (H - 8) // 4 + 1
    h2 = (h1 - 4) // 2 + 1
    h3 = h2 - 2
    feat = 64 * h3 * h3
    p.update({
        "wfc": lin_init(ks[6], feat, (feat, 512)),
        "bfc": lin_init(ks[7], feat, (512,)),
        "wv": lin_init(ks[8], 512, (512, 1)),
        "bv": lin_init(ks[9], 512, (1,)),
        "wa": lin_init(ks[10], 512, (512, n_actions)),
        "ba": lin_init(ks[11], 512, (n_actions,)),
    })
    return p


# ----------------------------------------------------------------------------
# One-time layout prep: single bf16 constant slab (weights + gathers + biases)
# ----------------------------------------------------------------------------
def prepare_params(params, input_shape, n_actions, batch):
    C, H, W = input_shape
    assert H % 4 == 0 and W % 4 == 0
    OH1, OW1 = (H - 8) // 4 + 1, (W - 8) // 4 + 1
    OH2, OW2 = (OH1 - 4) // 2 + 1, (OW1 - 4) // 2 + 1
    OH3, OW3 = OH2 - 2, OW2 - 2
    # TODO(synk): spatial sizes where conv3 output > 1x1 need an extra flatten gather.
    assert OH3 == 1 and OW3 == 1, "fused kernel assumes conv3 output is 1x1"
    assert n_actions + 1 <= LANES

    rows1 = batch * OH1 * OW1
    rows2 = _round_up(batch * OH2 * OW2, 8)
    rows3 = _round_up(batch, 8)
    assert rows1 <= LANES and rows2 <= LANES, "grow batch via a batch grid instead"
    taps2, taps3 = 16, 9
    oc1, oc2, oc3, hidden = 32, 64, 64, 512

    # Segment layout (all offsets / sizes multiples of 16 rows for bf16 tiling).
    segs = [("w1", C * 64), ("g2", taps2 * rows2), ("w2", taps2 * oc1),
            ("g3", _round_up(taps3 * rows3, 16)), ("w3", taps3 * oc2),
            ("wfc", (hidden // LANES) * oc3), ("wh", hidden), ("bias", 128)]
    off, total = {}, 0
    for name, n in segs:
        off[name] = total
        total += n
    off["b1"] = off["bias"]
    off["b2"] = off["bias"] + 16
    off["b3"] = off["bias"] + 32
    off["bh"] = off["bias"] + 48
    off["bfc"] = off["bias"] + 64           # 4 rows at +64, +80, +96, +112

    slab = np.zeros((total, LANES), np.float32)

    # conv1 weight, GEMM layout, rows ordered (c, kh, kw).
    slab[off["w1"]:off["w1"] + C * 64, :oc1] = \
        np.asarray(params["w1"], np.float32).reshape(oc1, -1).T

    # conv2: 0/1 spatial gather + stacked per-tap (32,64) weight blocks.
    w2 = np.asarray(params["w2"], np.float32)
    for kh in range(4):
        for kw in range(4):
            t = kh * 4 + kw
            for b in range(batch):
                for oh in range(OH2):
                    for ow in range(OW2):
                        r = b * OH2 * OW2 + oh * OW2 + ow
                        src = b * OH1 * OW1 + (2 * oh + kh) * OW1 + (2 * ow + kw)
                        slab[off["g2"] + t * rows2 + r, src] = 1.0
            slab[off["w2"] + t * oc1: off["w2"] + (t + 1) * oc1, :oc2] = \
                w2[:, :, kh, kw].T

    # conv3: gather + stacked per-tap (64,64) weight blocks.
    w3 = np.asarray(params["w3"], np.float32)
    for kh in range(3):
        for kw in range(3):
            t = kh * 3 + kw
            for b in range(batch):
                slab[off["g3"] + t * rows3 + b, b * OH2 * OW2 + kh * OW2 + kw] = 1.0
            slab[off["w3"] + t * oc2: off["w3"] + (t + 1) * oc2, :oc3] = \
                w3[:, :, kh, kw].T

    # fc weight as hidden/128 lane-blocks of (64, 128) (exactly the real data).
    wfc = np.asarray(params["wfc"], np.float32)
    for j in range(hidden // LANES):
        slab[off["wfc"] + j * oc3: off["wfc"] + (j + 1) * oc3, :] = \
            wfc[:, j * LANES:(j + 1) * LANES]

    # fused head: lanes 0..n-1 = advantage, lane n = value.
    wh = np.zeros((hidden, LANES), np.float32)
    wh[:, :n_actions] = np.asarray(params["wa"], np.float32)
    wh[:, n_actions] = np.asarray(params["wv"], np.float32)[:, 0]
    slab[off["wh"]:off["wh"] + hidden, :] = wh

    # biases.
    slab[off["b1"], :oc1] = np.asarray(params["b1"], np.float32)
    slab[off["b2"], :oc2] = np.asarray(params["b2"], np.float32)
    slab[off["b3"], :oc3] = np.asarray(params["b3"], np.float32)
    bh = np.zeros((LANES,), np.float32)
    bh[:n_actions] = np.asarray(params["ba"], np.float32)
    bh[n_actions] = np.asarray(params["bv"], np.float32)[0]
    slab[off["bh"], :] = bh
    bfc = np.asarray(params["bfc"], np.float32)
    for j in range(hidden // LANES):
        slab[off["bfc"] + 16 * j, :] = bfc[j * LANES:(j + 1) * LANES]

    dims = dict(OH1=OH1, OW1=OW1, rows1=rows1, rows2=rows2, rows3=rows3,
                taps2=taps2, taps3=taps3, c_in=C, oc1=oc1, oc2=oc2, oc3=oc3,
                hidden=hidden)
    return jnp.asarray(slab, jnp.bfloat16), off, dims


# ----------------------------------------------------------------------------
# Wrapper: lightweight conv1 patch extraction + the fused Pallas call
# ----------------------------------------------------------------------------
def _im2col_conv1(x, OH1, OW1):
    """NCHW x -> (B*OH1*OW1, C*64), column order (c, kh, kw). Stride 4, kernel 8."""
    B, C, H, W = x.shape
    xb = x.reshape(B, C, H // 4, 4, W // 4, 4)
    rows = jnp.concatenate([xb[:, :, :OH1], xb[:, :, 1:OH1 + 1]], axis=3)
    cols = jnp.concatenate([rows[:, :, :, :, :OW1], rows[:, :, :, :, 1:OW1 + 1]],
                           axis=5)
    patches = cols.transpose(0, 2, 4, 1, 3, 5)          # (B, OH1, OW1, C, KH, KW)
    return patches.reshape(B * OH1 * OW1, C * 64)


def make_forward(params, input_shape, n_actions, batch):
    slab, off, d = prepare_params(params, input_shape, n_actions, batch)
    OH1, OW1, rows3 = d["OH1"], d["OW1"], d["rows3"]

    kernel = functools.partial(
        _dueling_dqn_kernel, off=off, batch=batch, n_actions=n_actions,
        rows1=d["rows1"], rows2=d["rows2"], rows3=rows3,
        taps2=d["taps2"], taps3=d["taps3"], c_in=d["c_in"],
        oc1=d["oc1"], oc2=d["oc2"], oc3=d["oc3"], hidden=d["hidden"])

    flops = 2 * (d["rows1"] * d["c_in"] * 64 * d["oc1"]
                 + d["taps2"] * d["rows2"] * d["rows1"] * d["oc1"]
                 + d["taps2"] * d["rows2"] * d["oc1"] * d["oc2"]
                 + d["taps3"] * rows3 * d["rows2"] * d["oc2"]
                 + d["taps3"] * rows3 * d["oc2"] * d["oc3"]
                 + rows3 * d["oc3"] * d["hidden"]
                 + rows3 * d["hidden"] * LANES)
    bytes_accessed = (d["rows1"] * d["c_in"] * 64 * 2     # patches (bf16)
                      + slab.size * 2                     # constant slab (bf16)
                      + rows3 * LANES * 4)                # output (f32)

    fused = pl.pallas_call(
        kernel,
        out_shape=jax.ShapeDtypeStruct((rows3, LANES), jnp.float32),
        in_specs=[_VMEM, _VMEM],
        out_specs=_VMEM,
        compiler_params=pltpu.CompilerParams(vmem_limit_bytes=32 * 1024 * 1024),
        cost_estimate=pl.CostEstimate(flops=int(flops), transcendentals=0,
                                      bytes_accessed=int(bytes_accessed)),
    )
    # Gridless single block: total resident footprint ~2 MiB << VMEM everywhere.

    @jax.jit
    def forward(x, slab_):
        cols1 = _im2col_conv1(x, OH1, OW1).astype(jnp.bfloat16)
        q = fused(cols1, slab_)
        return q[:batch, :n_actions]          # lane-aligned slice starting at lane 0

    return lambda x: forward(x, slab)


# ----------------------------------------------------------------------------
# Pure-JAX f32 reference (matches the PyTorch module, incl. global adv.mean()).
# ----------------------------------------------------------------------------
def dueling_dqn_reference(params, x):
    def conv(x, w, b, s):
        y = lax.conv_general_dilated(x, w, (s, s), "VALID",
                                     dimension_numbers=("NCHW", "OIHW", "NCHW"))
        return jnp.maximum(y + b[None, :, None, None], 0.0)

    h = conv(x, params["w1"], params["b1"], 4)
    h = conv(h, params["w2"], params["b2"], 2)
    h = conv(h, params["w3"], params["b3"], 1)
    h = h.reshape(h.shape[0], -1)
    h = jnp.maximum(h @ params["wfc"] + params["bfc"], 0.0)
    value = h @ params["wv"] + params["bv"]
    adv = h @ params["wa"] + params["ba"]
    return value + (adv - jnp.mean(adv))


if __name__ == "__main__":
    key = jax.random.PRNGKey(0)
    k_x, k_p = jax.random.split(key)

    input_shape = (4, 36, 36)   # (C, H, W): 36 -> 8 -> 3 -> 1 through the conv stack
    n_actions = 6
    batch = 2

    x = jax.random.normal(k_x, (batch,) + input_shape, jnp.float32)
    params = init_params(k_p, input_shape, n_actions)

    fwd = make_forward(params, input_shape, n_actions, batch)
    q = jax.block_until_ready(fwd(x))
    q_ref = jax.block_until_ready(dueling_dqn_reference(params, x))

    assert q.shape == (batch, n_actions)
    # bf16 weights/activations vs f32 reference -> a few-percent tolerance.
    assert jnp.allclose(q, q_ref, rtol=5e-2, atol=5e-2), (q, q_ref)
    print("KERNEL_OK")
</pallas_src>

<mosaic_0001>
module attributes {stable_mosaic.version = 11 : i64} {
  func.func @_dueling_dqn_kernel(%arg0: memref<128x256xbf16, #tpu.memory_space<vmem>>, %arg1: memref<2704x128xbf16, #tpu.memory_space<vmem>>, %arg2: memref<8x128xf32, #tpu.memory_space<vmem>>) attributes {dimension_semantics = [], scalar_prefetch = 0 : i64, scratch_operands = 0 : i64, tpu.core_type = #tpu.core_type<tc>} {
    %c0 = arith.constant 0 : index
    %c0_0 = arith.constant 0 : index
    %0 = vector.load %arg1[%c0, %c0_0] : memref<2704x128xbf16, #tpu.memory_space<vmem>>, vector<256x32xbf16>
    %c0_1 = arith.constant 0 : index
    %c0_2 = arith.constant 0 : index
    %1 = vector.load %arg0[%c0_1, %c0_2] : memref<128x256xbf16, #tpu.memory_space<vmem>>, vector<128x256xbf16>
    %cst = arith.constant dense<0.000000e+00> : vector<128x32xf32>
    %2 = tpu.matmul %1, %0, %cst {dimension_numbers = #tpu.dot_dimension_numbers<[1], [0], [0], [1], [0, 0, 1, 1], [], []>} : vector<128x256xbf16>, vector<256x32xbf16>, vector<128x32xf32> -> vector<128x32xf32>
    %c2576 = arith.constant 2576 : index
    %c0_3 = arith.constant 0 : index
    %3 = vector.load %arg1[%c2576, %c0_3] : memref<2704x128xbf16, #tpu.memory_space<vmem>>, vector<1x32xbf16>
    %4 = arith.extf %3 : vector<1x32xbf16> to vector<1x32xf32>
    %5 = vector.broadcast %4 : vector<1x32xf32> to vector<128x32xf32>
    %6 = arith.addf %2, %5 : vector<128x32xf32>
    %cst_4 = arith.constant 0.000000e+00 : f32
    %7 = vector.broadcast %cst_4 : f32 to vector<128x32xf32>
    %8 = arith.maximumf %6, %7 : vector<128x32xf32>
    %9 = arith.truncf %8 : vector<128x32xf32> to vector<128x32xbf16>
    %c256 = arith.constant 256 : index
    %c0_5 = arith.constant 0 : index
    %10 = vector.load %arg1[%c256, %c0_5] : memref<2704x128xbf16, #tpu.memory_space<vmem>>, vector<384x128xbf16>
    %cst_6 = arith.constant dense<0.000000e+00> : vector<384x32xf32>
    %11 = tpu.matmul %10, %9, %cst_6 {dimension_numbers = #tpu.dot_dimension_numbers<[1], [0], [0], [1], [0, 0, 1, 1], [], []>} : vector<384x128xbf16>, vector<128x32xbf16>, vector<384x32xf32> -> vector<384x32xf32>
    %12 = vector.shape_cast %11 : vector<384x32xf32> to vector<16x24x32xf32>
    %13 = arith.truncf %12 : vector<16x24x32xf32> to vector<16x24x32xbf16>
    %c640 = arith.constant 640 : index
    %c0_7 = arith.constant 0 : index
    %14 = vector.load %arg1[%c640, %c0_7] : memref<2704x128xbf16, #tpu.memory_space<vmem>>, vector<512x64xbf16>
    %15 = vector.shape_cast %14 : vector<512x64xbf16> to vector<16x32x64xbf16>
    "tpu.trace_start"() <{level = 10 : i32, message = "trc,tco->tro"}> : () -> ()
    %cst_8 = arith.constant dense<0.000000e+00> : vector<16x24x64xf32>
    %16 = tpu.matmul %13, %15, %cst_8 {dimension_numbers = #tpu.dot_dimension_numbers<[2], [1], [1], [2], [0, 0, 0, 1, 1, 2], [0], [0]>} : vector<16x24x32xbf16>, vector<16x32x64xbf16>, vector<16x24x64xf32> -> vector<16x24x64xf32>
    "tpu.trace_stop"() : () -> ()
    %cst_9 = arith.constant dense<0.000000e+00> : vector<24x64xf32>
    %17 = vector.multi_reduction <add>, %16, %cst_9 [0] : vector<16x24x64xf32> to vector<24x64xf32>
    %c2592 = arith.constant 2592 : index
    %c0_10 = arith.constant 0 : index
    %18 = vector.load %arg1[%c2592, %c0_10] : memref<2704x128xbf16, #tpu.memory_space<vmem>>, vector<1x64xbf16>
    %19 = arith.extf %18 : vector<1x64xbf16> to vector<1x64xf32>
    %20 = vector.broadcast %19 : vector<1x64xf32> to vector<24x64xf32>
    %21 = arith.addf %17, %20 : vector<24x64xf32>
    %cst_11 = arith.constant 0.000000e+00 : f32
    %22 = vector.broadcast %cst_11 : f32 to vector<24x64xf32>
    %23 = arith.maximumf %21, %22 : vector<24x64xf32>
    %24 = arith.truncf %23 : vector<24x64xf32> to vector<24x64xbf16>
    %c1152 = arith.constant 1152 : index
    %c0_12 = arith.constant 0 : index
    %25 = vector.load %arg1[%c1152, %c0_12] : memref<2704x128xbf16, #tpu.memory_space<vmem>>, vector<72x24xbf16>
    %cst_13 = arith.constant dense<0.000000e+00> : vector<72x64xf32>
    %26 = tpu.matmul %25, %24, %cst_13 {dimension_numbers = #tpu.dot_dimension_numbers<[1], [0], [0], [1], [0, 0, 1, 1], [], []>} : vector<72x24xbf16>, vector<24x64xbf16>, vector<72x64xf32> -> vector<72x64xf32>
    %27 = vector.shape_cast %26 : vector<72x64xf32> to vector<9x8x64xf32>
    %28 = arith.truncf %27 : vector<9x8x64xf32> to vector<9x8x64xbf16>
    %c1232 = arith.constant 1232 : index
    %c0_14 = arith.constant 0 : index
    %29 = vector.load %arg1[%c1232, %c0_14] : memref<2704x128xbf16, #tpu.memory_space<vmem>>, vector<576x64xbf16>
    %30 = vector.shape_cast %29 : vector<576x64xbf16> to vector<9x64x64xbf16>
    "tpu.trace_start"() <{level = 10 : i32, message = "trc,tco->tro"}> : () -> ()
    %cst_15 = arith.constant dense<0.000000e+00> : vector<9x8x64xf32>
    %31 = tpu.matmul %28, %30, %cst_15 {dimension_numbers = #tpu.dot_dimension_numbers<[2], [1], [1], [2], [0, 0, 0, 1, 1, 2], [0], [0]>} : vector<9x8x64xbf16>, vector<9x64x64xbf16>, vector<9x8x64xf32> -> vector<9x8x64xf32>
    "tpu.trace_stop"() : () -> ()
    %cst_16 = arith.constant dense<0.000000e+00> : vector<8x64xf32>
    %32 = vector.multi_reduction <add>, %31, %cst_16 [0] : vector<9x8x64xf32> to vector<8x64xf32>
    %c2608 = arith.constant 2608 : index
    %c0_17 = arith.constant 0 : index
    %33 = vector.load %arg1[%c2608, %c0_17] : memref<2704x128xbf16, #tpu.memory_space<vmem>>, vector<1x64xbf16>
    %34 = arith.extf %33 : vector<1x64xbf16> to vector<1x64xf32>
    %35 = vector.broadcast %34 : vector<1x64xf32> to vector<8x64xf32>
    %36 = arith.addf %32, %35 : vector<8x64xf32>
    %cst_18 = arith.constant 0.000000e+00 : f32
    %37 = vector.broadcast %cst_18 : f32 to vector<8x64xf32>
    %38 = arith.maximumf %36, %37 : vector<8x64xf32>
    %39 = arith.truncf %38 : vector<8x64xf32> to vector<8x64xbf16>
    %c1808 = arith.constant 1808 : index
    %c0_19 = arith.constant 0 : index
    %40 = vector.load %arg1[%c1808, %c0_19] : memref<2704x128xbf16, #tpu.memory_space<vmem>>, vector<64x128xbf16>
    %c1872 = arith.constant 1872 : index
    %c0_20 = arith.constant 0 : index
    %41 = vector.load %arg1[%c1872, %c0_20] : memref<2704x128xbf16, #tpu.memory_space<vmem>>, vector<64x128xbf16>
    %c1936 = arith.constant 1936 : index
    %c0_21 = arith.constant 0 : index
    %42 = vector.load %arg1[%c1936, %c0_21] : memref<2704x128xbf16, #tpu.memory_space<vmem>>, vector<64x128xbf16>
    %c2000 = arith.constant 2000 : index
    %c0_22 = arith.constant 0 : index
    %43 = vector.load %arg1[%c2000, %c0_22] : memref<2704x128xbf16, #tpu.memory_space<vmem>>, vector<64x128xbf16>
    %44 = tpu.concatenate %40, %41, %42, %43 in 1 : vector<64x128xbf16>, vector<64x128xbf16>, vector<64x128xbf16>, vector<64x128xbf16> -> vector<64x512xbf16>
    %c2640 = arith.constant 2640 : index
    %c0_23 = arith.constant 0 : index
    %45 = vector.load %arg1[%c2640, %c0_23] : memref<2704x128xbf16, #tpu.memory_space<vmem>>, vector<1x128xbf16>
    %c2656 = arith.constant 2656 : index
    %c0_24 = arith.constant 0 : index
    %46 = vector.load %arg1[%c2656, %c0_24] : memref<2704x128xbf16, #tpu.memory_space<vmem>>, vector<1x128xbf16>
    %c2672 = arith.constant 2672 : index
    %c0_25 = arith.constant 0 : index
    %47 = vector.load %arg1[%c2672, %c0_25] : memref<2704x128xbf16, #tpu.memory_space<vmem>>, vector<1x128xbf16>
    %c2688 = arith.constant 2688 : index
    %c0_26 = arith.constant 0 : index
    %48 = vector.load %arg1[%c2688, %c0_26] : memref<2704x128xbf16, #tpu.memory_space<vmem>>, vector<1x128xbf16>
    %49 = tpu.concatenate %45, %46, %47, %48 in 1 : vector<1x128xbf16>, vector<1x128xbf16>, vector<1x128xbf16>, vector<1x128xbf16> -> vector<1x512xbf16>
    %cst_27 = arith.constant dense<0.000000e+00> : vector<8x512xf32>
    %50 = tpu.matmul %39, %44, %cst_27 {dimension_numbers = #tpu.dot_dimension_numbers<[1], [0], [0], [1], [0, 0, 1, 1], [], []>} : vector<8x64xbf16>, vector<64x512xbf16>, vector<8x512xf32> -> vector<8x512xf32>
    %51 = arith.extf %49 : vector<1x512xbf16> to vector<1x512xf32>
    %52 = vector.broadcast %51 : vector<1x512xf32> to vector<8x512xf32>
    %53 = arith.addf %50, %52 : vector<8x512xf32>
    %cst_28 = arith.constant 0.000000e+00 : f32
    %54 = vector.broadcast %cst_28 : f32 to vector<8x512xf32>
    %55 = arith.maximumf %53, %54 : vector<8x512xf32>
    %56 = arith.truncf %55 : vector<8x512xf32> to vector<8x512xbf16>
    %c2064 = arith.constant 2064 : index
    %c0_29 = arith.constant 0 : index
    %57 = vector.load %arg1[%c2064, %c0_29] : memref<2704x128xbf16, #tpu.memory_space<vmem>>, vector<512x128xbf16>
    %cst_30 = arith.constant dense<0.000000e+00> : vector<8x128xf32>
    %58 = tpu.matmul %56, %57, %cst_30 {dimension_numbers = #tpu.dot_dimension_numbers<[1], [0], [0], [1], [0, 0, 1, 1], [], []>} : vector<8x512xbf16>, vector<512x128xbf16>, vector<8x128xf32> -> vector<8x128xf32>
    %c2624 = arith.constant 2624 : index
    %c0_31 = arith.constant 0 : index
    %59 = vector.load %arg1[%c2624, %c0_31] : memref<2704x128xbf16, #tpu.memory_space<vmem>>, vector<1x128xbf16>
    %60 = arith.extf %59 : vector<1x128xbf16> to vector<1x128xf32>
    %61 = vector.broadcast %60 : vector<1x128xf32> to vector<8x128xf32>
    %62 = arith.addf %58, %61 : vector<8x128xf32>
    %63 = tpu.iota {dimensions = array<i32: 0>} : vector<8x128xi32>
    %64 = tpu.iota {dimensions = array<i32: 1>} : vector<8x128xi32>
    %c2_i32 = arith.constant 2 : i32
    %65 = vector.broadcast %c2_i32 : i32 to vector<8x128xi32>
    %66 = arith.cmpi slt, %63, %65 : vector<8x128xi32>
    %c6_i32 = arith.constant 6 : i32
    %67 = vector.broadcast %c6_i32 : i32 to vector<8x128xi32>
    %68 = arith.cmpi slt, %64, %67 : vector<8x128xi32>
    %69 = arith.andi %66, %68 : vector<8x128xi1>
    %cst_32 = arith.constant 0.000000e+00 : f32
    %70 = vector.broadcast %cst_32 : f32 to vector<8x128xf32>
    %71 = arith.select %69, %62, %70 : vector<8x128xi1>, vector<8x128xf32>
    %72 = vector.shape_cast %71 : vector<8x128xf32> to vector<1x8x128xf32>
    %cst_33 = arith.constant dense<0.000000e+00> : vector<1xf32>
    %73 = vector.multi_reduction <add>, %72, %cst_33 [1, 2] : vector<1x8x128xf32> to vector<1xf32>
    %74 = vector.shape_cast %73 : vector<1xf32> to vector<1x1x1xf32>
    %75 = vector.extract %74[0, 0, 0] : f32 from vector<1x1x1xf32>
    %cst_34 = arith.constant 0.0833333358 : f32
    %76 = arith.mulf %75, %cst_34 : f32
    %77 = vector.extract_strided_slice %62 {offsets = [0, 6], sizes = [8, 1], strides = [1, 1]} : vector<8x128xf32> to vector<8x1xf32>
    %78 = vector.broadcast %77 : vector<8x1xf32> to vector<8x128xf32>
    %79 = arith.addf %78, %62 : vector<8x128xf32>
    %80 = vector.broadcast %76 : f32 to vector<8x128xf32>
    %81 = arith.subf %79, %80 : vector<8x128xf32>
    %c0_35 = arith.constant 0 : index
    %c0_36 = arith.constant 0 : index
    %82 = vector.load %arg2[%c0_35, %c0_36] : memref<8x128xf32, #tpu.memory_space<vmem>>, vector<8x128xf32>
    tpu.vector_store %arg2[%c0_35, %c0_36], %81 {strides = array<i32>} : memref<8x128xf32, #tpu.memory_space<vmem>>, vector<8x128xf32>,
    return
  }
}

</mosaic_0001>

<bundles_post_ra>
// kernel: forward.1
= control target key start
LH: loop header
LB: loop body
LE: loop exit
PB: predicated region body
PF: predicated region fallthrough
CT: control target
= control target key end

     0   :  { %v62_v33 = vlaneseq  ;;  %vm888_vm0 = vcmask 261120   ;;  %vm4491_vm1 = vmmov 0   ;;  %vm1933_vm2 = vcmask 523264   ;;  %s5300_s1 = inlined_call_operand.vmem [shape: bf16[2704,128], index: 1, kind: input, shape index: {}]   ;;  %s5301_s0 = inlined_call_operand.vmem [shape: bf16[128,256], index: 0, kind: input, shape index: {}]   ;;  %s5302_s2 = inlined_call_operand.vmem [shape: f32[8,128], index: 2, kind: output, shape index: {}]  }
   0x1   :  { %v4305_v0 = vld [vmem:[%s5300_s1 + $0x78] sm:$0xff]   ;;  %v4307_v2 = vld [vmem:[%s5300_s1 + $0x70] sm:$0xff]   ;;  %v4309_v4 = vld [vmem:[%s5300_s1 + $0x68] sm:$0xff]   ;;  %vm2089_vm3 = vcmask 1043456   ;;  %vm2073_vm4 = vcmask 195584  }
   0x2   :  { %v4306_v1 = vld [vmem:[%s5300_s1 + $0x38] sm:$0xff]   ;;  %3718 = vmatprep.subr.bf16.mxu0 %v4305_v0  ;;  %v4308_v3 = vld [vmem:[%s5300_s1 + $0x30] sm:$0xff]   ;;  %v4310_v5 = vld [vmem:[%s5300_s1 + $0x28] sm:$0xff]   ;;  %v4609_v34 = vshrl.u32 %v62_v33, 7 }
   0x3   :  { %3719 = vmatpush3.bf16.msra.mxu0 %v4306_v1  ;;  %v4311_v6 = vld [vmem:[%s5300_s1 + $0x60] sm:$0xff]   ;;  %v4313_v8 = vld [vmem:[%s5300_s1 + $0x58] sm:$0xff]   ;;  %v4315_v10 = vld [vmem:[%s5300_s1 + $0x50] sm:$0xff]  }
   0x4   :  { %3720 = vmatprep.subr.bf16.mxu0 %v4307_v2  ;;  %v4312_v7 = vld [vmem:[%s5300_s1 + $0x20] sm:$0xff]   ;;  %v4314_v9 = vld [vmem:[%s5300_s1 + $0x18] sm:$0xff]   ;;  %v4316_v12 = vld [vmem:[%s5300_s1 + $0x10] sm:$0xff]   ;;  %v4615_v37 = vsub.s32 0, %v4609_v34  ;;  %vm3466_vm5 = vcmp.lt.s32.totalorder %v4609_v34, 2 }
   0x5   :  { %v4323_v11 = vld [vmem:[%s5301_s0 + $0x4] ss:$8 sps:$4 sm:$0xff]   ;;  %v4321_v17 = vld [vmem:[%s5301_s0] ss:$8 sps:$4 sm:$0xff]   ;;  %v4324_v18 = vld [vmem:[%s5301_s0 + $0x14] ss:$8 sps:$4 sm:$0xff]  }
   0x6   :  { %274 = vmatprep.mubr.bf16.mxu0 %v4323_v11  ;;  %v4317_v13 = vld [vmem:[%s5300_s1 + $0x48] sm:$0xff]   ;;  %v4319_v15 = vld [vmem:[%s5300_s1 + $0x40] sm:$0xff]   ;;  %v4326_v19 = vld [vmem:[%s5301_s0 + $0x10] ss:$8 sps:$4 sm:$0xff]  }
   0x7   :  { %3721 = vmatpush3.bf16.msra.mxu0 %v4308_v3  ;;  %v4318_v14 = vld [vmem:[%s5300_s1 + $0x8] sm:$0xff]   ;;  %v4320_v16 = vld [vmem:[%s5300_s1] sm:$0xff]   ;;  %v4330_v22 = vld [vmem:[%s5301_s0 + $0x34] ss:$8 sps:$4 sm:$0xff]  }
   0x8   :  { %3722 = vmatprep.subr.bf16.mxu0 %v4309_v4  ;;  %v4327_v20 = vld [vmem:[%s5301_s0 + $0x24] ss:$8 sps:$4 sm:$0xff]   ;;  %v4329_v21 = vld [vmem:[%s5301_s0 + $0x20] ss:$8 sps:$4 sm:$0xff]   ;;  %v4332_v23 = vld [vmem:[%s5301_s0 + $0x30] ss:$8 sps:$4 sm:$0xff]  }
   0x9   :  { %v4333_v24 = vld [vmem:[%s5301_s0 + $0x44] ss:$8 sps:$4 sm:$0xff]   ;;  %v4335_v25 = vld [vmem:[%s5301_s0 + $0x40] ss:$8 sps:$4 sm:$0xff]   ;;  %v4336_v26 = vld [vmem:[%s5301_s0 + $0x54] ss:$8 sps:$4 sm:$0xff]  }
   0xa   :  { %v4338_v27 = vld [vmem:[%s5301_s0 + $0x50] ss:$8 sps:$4 sm:$0xff]   ;;  %v4339_v28 = vld [vmem:[%s5301_s0 + $0x64] ss:$8 sps:$4 sm:$0xff]   ;;  %v4341_v29 = vld [vmem:[%s5301_s0 + $0x60] ss:$8 sps:$4 sm:$0xff]  }
   0xb   :  { %3723 = vmatpush3.bf16.msra.mxu0 %v4310_v5  ;;  %v4342_v30 = vld [vmem:[%s5301_s0 + $0x74] ss:$8 sps:$4 sm:$0xff]   ;;  %v4344_v31 = vld [vmem:[%s5301_s0 + $0x70] ss:$8 sps:$4 sm:$0xff]   ;;  %v4345_v32 = vld [vmem:[%s5300_s1 + $0x80] sm:$0xff]  }
   0xc   :  { %3724 = vmatprep.subr.bf16.mxu0 %v4311_v6  ;;  %3990 = vmatprep.mubr.bf16.mxu1 %v4345_v32  ;;  %v60_v35 = vld [vmem:[%s5300_s1 + $0x508] sm:$0x1] }
   0xd   :  { %v61_v36 = vunpack.c.l.bf16 %v60_v35 }
   0xf   :  { %3725 = vmatpush3.bf16.msra.mxu0 %v4312_v7  ;;  %v4618_v40 = vrot.slane %v61_v36, %v4615_v37 }
  0x10   :  { %3726 = vmatprep.subr.bf16.mxu0 %v4313_v8 }
  0x13   :  { %3727 = vmatpush3.bf16.msra.mxu0 %v4314_v9 }
  0x14   :  { %3728 = vmatprep.subr.bf16.mxu0 %v4315_v10 }
  0x17   :  { %3729 = vmatpush3.bf16.msra.mxu0 %v4316_v12 }
  0x18   :  { %3730 = vmatprep.subr.bf16.mxu0 %v4317_v13 }
  0x1b   :  { %3731 = vmatpush3.bf16.msra.mxu0 %v4318_v14 }
  0x1c   :  { %3732 = vmatprep.subr.bf16.mxu0 %v4319_v15 }
  0x1f   :  { %3733 = vmatpush3.bf16.msra.mxu0 %v4320_v16 }
  0x22   :  { %275 = vmatmul.mubr.bf16.vlgmr.msra.gmra.mxu0 %v4321_v17 }
  0x23   :  { %282 = vmatprep.mubr.bf16.mxu0 %v4324_v18 }
  0x2a   :  { %283 = vmatmul.mubr.bf16.gmra.mxu0 %v4326_v19 }
  0x2b   :  { %290 = vmatprep.mubr.bf16.mxu0 %v4327_v20 }
  0x32   :  { %291 = vmatmul.mubr.bf16.gmra.mxu0 %v4329_v21 }
  0x33   :  { %298 = vmatprep.mubr.bf16.mxu0 %v4330_v22 }
  0x3a   :  { %299 = vmatmul.mubr.bf16.gmra.mxu0 %v4332_v23 }
  0x3b   :  { %306 = vmatprep.mubr.bf16.mxu0 %v4333_v24 }
  0x42   :  { %307 = vmatmul.mubr.bf16.gmra.mxu0 %v4335_v25 }
  0x43   :  { %314 = vmatprep.mubr.bf16.mxu0 %v4336_v26 }
  0x4a   :  { %315 = vmatmul.mubr.bf16.gmra.mxu0 %v4338_v27 }
  0x4b   :  { %322 = vmatprep.mubr.bf16.mxu0 %v4339_v28  ;;  %v4370_v28 = vld [vmem:[%s5300_s1 + $0x158] sm:$0xff]  }
  0x4c   :  { %4046 = vmatprep.subr.bf16.mxu0 %v4370_v28 }
  0x4d   :  { %4047 = vmatpush3.bf16.msra.mxu0 %v4370_v28  ;;  %v4373_v28 = vld [vmem:[%s5300_s1 + $0x168] sm:$0xff]  }
  0x52   :  { %323 = vmatmul.mubr.bf16.gmra.mxu0 %v4341_v29 }
  0x53   :  { %330 = vmatprep.mubr.bf16.mxu0 %v4342_v30 }
  0x5a   :  { %331 = vmatmul.mubr.bf16.gmra.mxu0 %v4344_v31 }
  0xe2   :  { %v3734_v38 = vpop.f32.mrf.mxu0 }
  0xe4   :  { %v3735_v39 = vpop.f32.mrf.mxu0 }
  0xe5   :  { %v3736_v41 = vadd.f32 %v3735_v39, %v3734_v38 }
  0xe6   :  { %v3737_v42 = vpop.f32.mrf.mxu0 }
  0xe7   :  { %v277_v44 = vadd.f32 %v3736_v41, %v4618_v40 }
  0xe8   :  { %v3738_v43 = vpop.f32.mrf.mxu0 }
  0xe9   :  { %v3739_v45 = vadd.f32 %v3738_v43, %v3737_v42  ;;  %v339_v49 = vmax.f32 %v277_v44, 0.0 }
  0xea   :  { %v3740_v46 = vpop.f32.mrf.mxu0 }
  0xeb   :  { %v280_v47 = vadd.f32 %v3739_v45, %v4618_v40 }
  0xec   :  { %v3741_v48 = vpop.f32.mrf.mxu0 }
  0xed   :  { %v340_v50 = vmax.f32 %v280_v47, 0.0  ;;  %v3742_v51 = vadd.f32 %v3741_v48, %v3740_v46 }
  0xee   :  { %v3743_v52 = vpop.f32.mrf.mxu0 }
  0xef   :  { %v4622_v53 = vpack.c.bf16 %v340_v50, %v339_v49  ;;  %v285_v55 = vadd.f32 %v3742_v51, %v4618_v40 }
  0xf0   :  { %v3744_v54 = vpop.f32.mrf.mxu0 }
  0xf1   :  { %v3745_v56 = vadd.f32 %v3744_v54, %v3743_v52  ;;  %v341_v60 = vmax.f32 %v285_v55, 0.0 }
  0xf2   :  { %v4625_v57 = vpop.f32.mrf.mxu0 }
  0xf3   :  { %v288_v58 = vadd.f32 %v3745_v56, %v4618_v40 }
  0xf4   :  { %v4628_v59 = vpop.f32.mrf.mxu0 }
  0xf5   :  { %v342_v61 = vmax.f32 %v288_v58, 0.0  ;;  %v3748_v58 = vadd.f32 %v4628_v59, %v4625_v57  ;;  %v4346_v57 = vld [vmem:[%s5300_s1 + $0x88] sm:$0xff]   ;;  %v4347_v59 = vld [vmem:[%s5300_s1 + $0x90] sm:$0xff]  }
  0xf6   :  { %v3749_v62 = vpop.f32.mrf.mxu0 }
  0xf7   :  { %v4630_v63 = vpack.c.bf16 %v342_v61, %v341_v60 }
  0xf8   :  { %v3750_v0 = vpop.f32.mrf.mxu0 }
  0xf9   :  { %v3751_v52 = vadd.f32 %v3750_v0, %v3749_v62 }
  0xfa   :  { %v3752_v1 = vpop.f32.mrf.mxu0 }
  0xfc   :  { %v3753_v2 = vpop.f32.mrf.mxu0 }
  0xfd   :  { %v3754_v49 = vadd.f32 %v3753_v2, %v3752_v1 }
  0xfe   :  { %v3755_v3 = vpop.f32.mrf.mxu0 }
  0xff   :  { %v301_v60 = vadd.f32 %v3754_v49, %v4618_v40  ;;  %v4374_v49 = vld [vmem:[%s5300_s1 + $0x160] sm:$0xff]  }
 0x100   :  { %v3756_v4 = vpop.f32.mrf.mxu0 }
 0x101   :  { %v3757_v45 = vadd.f32 %v3756_v4, %v3755_v3  ;;  %v296_v3 = vadd.f32 %v3751_v52, %v4618_v40  ;;  %v293_v4 = vadd.f32 %v3748_v58, %v4618_v40  ;;  %v345_v62 = vmax.f32 %v301_v60, 0.0 }
 0x102   :  { %v3758_v5 = vpop.f32.mrf.mxu0 }
 0x103   :  { %v304_v54 = vadd.f32 %v3757_v45, %v4618_v40  ;;  %v344_v0 = vmax.f32 %v296_v3, 0.0 }
 0x104   :  { %v3759_v6 = vpop.f32.mrf.mxu0 }
 0x105   :  { %v3760_v41 = vadd.f32 %v3759_v6, %v3758_v5  ;;  %v346_v1 = vmax.f32 %v304_v54, 0.0  ;;  %v343_v6 = vmax.f32 %v293_v4, 0.0  ;;  %v4375_v54 = vld [vmem:[%s5300_s1 + $0x178] sm:$0xff]  }
 0x106   :  { %v3761_v7 = vpop.f32.mrf.mxu0 }
 0x107   :  { %v309_v50 = vadd.f32 %v3760_v41, %v4618_v40  ;;  %v358_v5 = vpack.c.bf16 %v346_v1, %v345_v62 }
 0x108   :  { %v3762_v8 = vpop.f32.mrf.mxu0 }
 0x109   :  { %v3763_v32 = vadd.f32 %v3762_v8, %v3761_v7  ;;  %v347_v61 = vmax.f32 %v309_v50, 0.0  ;;  %v357_v7 = vpack.c.bf16 %v344_v0, %v343_v6  ;;  %v4349_v8 = vld [vmem:[%s5300_s1 + $0xa0] sm:$0xff]  }
 0x10a   :  { %v3764_v9 = vpop.f32.mrf.mxu0  ;;  %v4379_v6 = vld [vmem:[%s5300_s1 + $0x180] sm:$0xff]  }
 0x10b   :  { %v312_v46 = vadd.f32 %v3763_v32, %v4618_v40 }
 0x10c   :  { %v3765_v10 = vpop.f32.mrf.mxu0 }
 0x10d   :  { %v3766_v29 = vadd.f32 %v3765_v10, %v3764_v9  ;;  %v348_v55 = vmax.f32 %v312_v46, 0.0  ;;  %v4351_v9 = vld [vmem:[%s5300_s1 + $0xb0] sm:$0xff]   ;;  %v4352_v10 = vld [vmem:[%s5300_s1 + $0xb8] sm:$0xff]  }
 0x10e   :  { %v3767_v11 = vpop.f32.mrf.mxu0  ;;  %v4382_v46 = vld [vmem:[%s5300_s1 + $0x1b8] sm:$0xff]  }
 0x10f   :  { %v317_v42 = vadd.f32 %v3766_v29, %v4618_v40  ;;  %v359_v2 = vpack.c.bf16 %v348_v55, %v347_v61  ;;  %v4368_v29 = vld [vmem:[%s5300_s1 + $0x138] sm:$0xff]   ;;  %v4376_v61 = vld [vmem:[%s5300_s1 + $0x170] sm:$0xff]  }
 0x110   :  { %v3768_v12 = vpop.f32.mrf.mxu0 }
 0x111   :  { %v3769_v24 = vadd.f32 %v3768_v12, %v3767_v11  ;;  %v349_v51 = vmax.f32 %v317_v42, 0.0  ;;  %v4353_v11 = vld [vmem:[%s5300_s1 + $0xc0] sm:$0xff]   ;;  %v4354_v12 = vld [vmem:[%s5300_s1 + $0xc8] sm:$0xff]   ;;  %v4380_v42 = vld [vmem:[%s5300_s1 + $0x190] sm:$0xff]  }
 0x112   :  { %v3770_v13 = vpop.f32.mrf.mxu0 }
 0x113   :  { %v320_v35 = vadd.f32 %v3769_v24, %v4618_v40  ;;  %v4364_v24 = vld [vmem:[%s5300_s1 + $0x118] sm:$0xff]  }
 0x114   :  { %v3771_v14 = vpop.f32.mrf.mxu0 }
 0x115   :  { %v3772_v22 = vadd.f32 %v3771_v14, %v3770_v13  ;;  %v350_v47 = vmax.f32 %v320_v35, 0.0  ;;  %v4355_v13 = vld [vmem:[%s5300_s1 + $0xd0] sm:$0xff]   ;;  %v4356_v14 = vld [vmem:[%s5300_s1 + $0xd8] sm:$0xff]  }
 0x116   :  { %v3773_v15 = vpop.f32.mrf.mxu0 }
 0x117   :  { %v325_v30 = vadd.f32 %v3772_v22, %v4618_v40  ;;  %v360_v56 = vpack.c.bf16 %v350_v47, %v349_v51  ;;  %v4371_v22 = vld [vmem:[%s5300_s1 + $0x150] sm:$0xff]  }
 0x118   :  { %v3774_v16 = vpop.f32.mrf.mxu0  ;;  %4048 = vmatprep.subr.bf16.mxu0 %v4371_v22 }
 0x119   :  { %v3775_v19 = vadd.f32 %v3774_v16, %v3773_v15  ;;  %v351_v43 = vmax.f32 %v325_v30, 0.0  ;;  %v4357_v15 = vld [vmem:[%s5300_s1 + $0xe0] sm:$0xff]   ;;  %v4358_v16 = vld [vmem:[%s5300_s1 + $0xe8] sm:$0xff]   ;;  %4049 = vmatpush3.bf16.msra.mxu0 %v4371_v22  ;;  %v4378_v30 = vld [vmem:[%s5300_s1 + $0x198] sm:$0xff]  }
 0x11a   :  { %v3776_v17 = vpop.f32.mrf.mxu0  ;;  %4054 = vmatprep.subr.bf16.mxu0 %v4373_v28 }
 0x11b   :  { %v328_v25 = vadd.f32 %v3775_v19, %v4618_v40  ;;  %v4361_v19 = vld [vmem:[%s5300_s1 + $0x100] sm:$0xff]  }
 0x11c   :  { %v3777_v18 = vpop.f32.mrf.mxu0 }
 0x11d   :  { %v3778_v20 = vadd.f32 %v3777_v18, %v3776_v17  ;;  %v352_v36 = vmax.f32 %v328_v25, 0.0  ;;  %v4359_v17 = vld [vmem:[%s5300_s1 + $0xf0] sm:$0xff]   ;;  %v4360_v18 = vld [vmem:[%s5300_s1 + $0xf8] sm:$0xff]   ;;  %v4365_v25 = vld [vmem:[%s5300_s1 + $0x120] sm:$0xff]  }
 0x11e   :  { %v3779_v21 = vpop.f32.mrf.mxu0 }
 0x11f   :  { %v333_v26 = vadd.f32 %v3778_v20, %v4618_v40  ;;  %v361_v48 = vpack.c.bf16 %v352_v36, %v351_v43  ;;  %v4362_v20 = vld [vmem:[%s5300_s1 + $0x108] sm:$0xff]  }
 0x120   :  { %v3780_v23 = vpop.f32.mrf.mxu0 }
 0x121   :  { %v3781_v27 = vadd.f32 %v3780_v23, %v3779_v21  ;;  %v353_v38 = vmax.f32 %v333_v26, 0.0  ;;  %v4363_v21 = vld [vmem:[%s5300_s1 + $0x110] sm:$0xff]   ;;  %v4372_v23 = vld [vmem:[%s5300_s1 + $0x140] sm:$0xff]   ;;  %v4366_v26 = vld [vmem:[%s5300_s1 + $0x128] sm:$0xff]  }
 0x123   :  { %v336_v31 = vadd.f32 %v3781_v27, %v4618_v40  ;;  %v4369_v40 = vld [vmem:[%s5300_s1 + $0x148] sm:$0xff]   ;;  %v4367_v27 = vld [vmem:[%s5300_s1 + $0x130] sm:$0xff]  }
 0x125   :  { %v354_v39 = vmax.f32 %v336_v31, 0.0 }
 0x127   :  { %v362_v44 = vpack.c.bf16 %v354_v39, %v353_v38 }
 0x129   :  { %3974 = vmatprep.subr.bf16.mxu1 %v362_v44 }
 0x12a   :  { %3975 = vmatpush3.bf16.msra.mxu1 %v362_v44 }
 0x12b   :  { %3976 = vmatprep.subr.bf16.mxu1 %v361_v48 }
 0x12e   :  { %3977 = vmatpush3.bf16.msra.mxu1 %v361_v48 }
 0x12f   :  { %3978 = vmatprep.subr.bf16.mxu1 %v360_v56 }
 0x132   :  { %3979 = vmatpush3.bf16.msra.mxu1 %v360_v56 }
 0x133   :  { %3980 = vmatprep.subr.bf16.mxu1 %v359_v2 }
 0x136   :  { %3981 = vmatpush3.bf16.msra.mxu1 %v359_v2  ;;  %v4377_v2 = vld [vmem:[%s5300_s1 + $0x188] sm:$0xff]  }
 0x137   :  { %3982 = vmatprep.subr.bf16.mxu1 %v358_v5 }
 0x13a   :  { %3983 = vmatpush3.bf16.msra.mxu1 %v358_v5 }
 0x13b   :  { %3984 = vmatprep.subr.bf16.mxu1 %v357_v7 }
 0x13e   :  { %3985 = vmatpush3.bf16.msra.mxu1 %v357_v7 }
 0x13f   :  { %3986 = vmatprep.subr.bf16.mxu1 %v4630_v63 }
 0x142   :  { %3987 = vmatpush3.bf16.msra.mxu1 %v4630_v63  ;;  %v4348_v63 = vld [vmem:[%s5300_s1 + $0x98] sm:$0xff]  }
 0x143   :  { %3988 = vmatprep.subr.bf16.mxu1 %v4622_v53 }
 0x146   :  { %3989 = vmatpush3.bf16.msra.mxu1 %v4622_v53  ;;  %v4350_v53 = vld [vmem:[%s5300_s1 + $0xa8] sm:$0xff]  }
 0x147   :  { %4038 = vmatprep.subr.bf16.mxu1 %v4369_v40 }
 0x149   :  { %3991 = vmatmul.mubr.bf16.vlgmr.msra.gmra.mxu1 %v4346_v57 }
 0x14a   :  { %3994 = vmatprep.mubr.bf16.mxu1 %v4347_v59  ;;  %4039 = vmatpush3.bf16.msra.mxu1 %v4369_v40  ;;  %v4381_v59 = vld [vmem:[%s5300_s1 + $0x1a8] sm:$0xff]  }
 0x14b   :  { %4040 = vmatprep.subr.bf16.mxu1 %v4372_v23 }
 0x14e   :  { %4041 = vmatpush3.bf16.msra.mxu1 %v4372_v23 }
 0x14f   :  { %4078 = vmatprep.subr.bf16.mxu1 %v4378_v30 }
 0x151   :  { %3995 = vmatmul.mubr.bf16.gmra.mxu1 %v4348_v63 }
 0x152   :  { %3998 = vmatprep.mubr.bf16.mxu1 %v4349_v8 }
 0x159   :  { %3999 = vmatmul.mubr.bf16.gmra.mxu1 %v4350_v53 }
 0x15a   :  { %4002 = vmatprep.mubr.bf16.mxu1 %v4351_v9 }
 0x161   :  { %4003 = vmatmul.mubr.bf16.gmra.mxu1 %v4352_v10  ;;  %v4383_v10 = vld [vmem:[%s5300_s1 + $0x1a0] sm:$0xff]  }
 0x162   :  { %4006 = vmatprep.mubr.bf16.mxu1 %v4353_v11 }
 0x169   :  { %4007 = vmatmul.mubr.bf16.gmra.mxu1 %v4354_v12 }
 0x16a   :  { %4010 = vmatprep.mubr.bf16.mxu1 %v4355_v13  ;;  %v4384_v13 = vld [vmem:[%s5300_s1 + $0x1b0] sm:$0xff]  }
 0x171   :  { %4011 = vmatmul.mubr.bf16.gmra.mxu1 %v4356_v14 }
 0x172   :  { %4014 = vmatprep.mubr.bf16.mxu1 %v4357_v15  ;;  %v4385_v15 = vld [vmem:[%s5300_s1 + $0x1c8] sm:$0xff]  }
 0x179   :  { %4015 = vmatmul.mubr.bf16.gmra.mxu1 %v4358_v16 }
 0x17a   :  { %4018 = vmatprep.mubr.bf16.mxu1 %v4359_v17  ;;  %v4387_v17 = vld [vmem:[%s5300_s1 + $0x1d8] sm:$0xff]  }
 0x181   :  { %4019 = vmatmul.mubr.bf16.gmra.mxu1 %v4360_v18 }
 0x182   :  { %4022 = vmatprep.mubr.bf16.mxu1 %v4361_v19 }
 0x189   :  { %4023 = vmatmul.mubr.bf16.gmra.mxu1 %v4362_v20 }
 0x18a   :  { %4026 = vmatprep.mubr.bf16.mxu1 %v4363_v21  ;;  %v4386_v21 = vld [vmem:[%s5300_s1 + $0x1c0] sm:$0xff]  }
 0x191   :  { %4027 = vmatmul.mubr.bf16.gmra.mxu1 %v4364_v24  ;;  %v4388_v24 = vld [vmem:[%s5300_s1 + $0x1d0] sm:$0xff]  }
 0x192   :  { %4030 = vmatprep.mubr.bf16.mxu1 %v4365_v25 }
 0x199   :  { %4031 = vmatmul.mubr.bf16.gmra.mxu1 %v4366_v26  ;;  %v4389_v26 = vld [vmem:[%s5300_s1 + $0x1e8] sm:$0xff]  }
 0x19a   :  { %4034 = vmatprep.mubr.bf16.mxu1 %v4367_v27 }
 0x1a1   :  { %4035 = vmatmul.mubr.bf16.gmra.mxu1 %v4368_v29 }
 0x209   :  { %v3992_v31 = vpop.f32.mrf.mxu1 }
 0x20a   :  { %v781_v39 = vpack.c.bf16 %v3992_v31, %v3992_v31 }
 0x20b   :  { %v589_v32 = vpop.f32.mrf.mxu1 }
 0x20d   :  { %v3993_v35 = vpop.f32.mrf.mxu1 }
 0x20f   :  { %v592_v36 = vpop.f32.mrf.mxu1 }
 0x210   :  { %v780_v38 = vpack.c.bf16 %v592_v36, %v589_v32 }
 0x211   :  { %v3996_v41 = vpop.f32.mrf.mxu1 }
 0x212   :  { %4042 = vmatprep.mubr.msk.bf16.mxu1 %vm888_vm0, %v780_v38 }
 0x213   :  { %v605_v43 = vpop.f32.mrf.mxu1  ;;  %4043 = vmatmul.mubr.msk.bf16.vlgmr.msra.gmra.mxu1 %vm888_vm0, %v781_v39 }
 0x214   :  { %v782_v44 = vpack.c.bf16 %v605_v43, %v3993_v35  ;;  %4079 = vmatpush3.bf16.msra.mxu1 %v4378_v30  ;;  %v4390_v35 = vld [vmem:[%s5300_s1 + $0x1e0] sm:$0xff]  }
 0x215   :  { %v3997_v45 = vpop.f32.mrf.mxu1  ;;  %4080 = vmatprep.subr.bf16.mxu1 %v4380_v42 }
 0x216   :  { %4050 = vmatprep.mubr.msk.bf16.mxu0 %vm888_vm0, %v782_v44  ;;  %v784_v50 = vpack.c.bf16 %v3997_v45, %v3996_v41  ;;  %v4393_v41 = vld [vmem:[%s5300_s1 + $0x208] sm:$0xff]   ;;  %v4392_v45 = vld [vmem:[%s5300_s1 + $0x1f0] sm:$0xff]  }
 0x217   :  { %v608_v47 = vpop.f32.mrf.mxu1 }
 0x218   :  { %v783_v48 = vpack.c.bf16 %v608_v47, %v608_v47  ;;  %4081 = vmatpush3.bf16.msra.mxu1 %v4380_v42 }
 0x219   :  { %v4000_v51 = vpop.f32.mrf.mxu1  ;;  %4094 = vmatprep.subr.bf16.mxu1 %v4382_v46 }
 0x21a   :  { %4051 = vmatmul.mubr.msk.bf16.vlgmr.msra.gmra.mxu0 %vm888_vm0, %v783_v48 }
 0x21b   :  { %v621_v52 = vpop.f32.mrf.mxu1  ;;  %4055 = vmatpush3.bf16.msra.mxu0 %v4373_v28  ;;  %4058 = vmatprep.mubr.msk.bf16.mxu0 %vm888_vm0, %v784_v50  ;;  %v4391_v28 = vld [vmem:[%s5300_s1 + $0x1f8] sm:$0xff]  }
 0x21c   :  { %4056 = vmatprep.subr.bf16.mxu0 %v4374_v49  ;;  %v785_v58 = vpack.c.bf16 %v621_v52, %v621_v52  ;;  %v4395_v50 = vld [vmem:[%s5300_s1 + $0x218] sm:$0xff]  }
 0x21d   :  { %v4001_v55 = vpop.f32.mrf.mxu1 }
 0x21e   :  { %v787_v0 = vpack.c.bf16 %v4001_v55, %v4001_v55  ;;  %v4397_v55 = vld [vmem:[%s5300_s1 + $0x228] sm:$0xff]  }
 0x21f   :  { %v624_v56 = vpop.f32.mrf.mxu1  ;;  %4057 = vmatpush3.bf16.msra.mxu0 %v4374_v49  ;;  %v4394_v49 = vld [vmem:[%s5300_s1 + $0x200] sm:$0xff]  }
 0x220   :  { %v786_v60 = vpack.c.bf16 %v4000_v51, %v624_v56  ;;  %4062 = vmatprep.subr.bf16.mxu0 %v4375_v54 }
 0x221   :  { %v4004_v3 = vpop.f32.mrf.mxu1 }
 0x222   :  { %4059 = vmatmul.mubr.msk.bf16.vlgmr.msra.gmra.mxu0 %vm888_vm0, %v785_v58  ;;  %v789_v53 = vpack.c.bf16 %v4004_v3, %v4004_v3 }
 0x223   :  { %v637_v1 = vpop.f32.mrf.mxu1  ;;  %4063 = vmatpush3.bf16.msra.mxu0 %v4375_v54  ;;  %4066 = vmatprep.mubr.msk.bf16.mxu0 %vm888_vm0, %v786_v60  ;;  %v4396_v60 = vld [vmem:[%s5300_s1 + $0x210] sm:$0xff]  }
 0x224   :  { %4064 = vmatprep.subr.bf16.mxu0 %v4376_v61 }
 0x225   :  { %v4005_v4 = vpop.f32.mrf.mxu1 }
 0x227   :  { %v640_v62 = vpop.f32.mrf.mxu1  ;;  %4065 = vmatpush3.bf16.msra.mxu0 %v4376_v61 }
 0x228   :  { %v788_v5 = vpack.c.bf16 %v640_v62, %v637_v1  ;;  %4070 = vmatprep.subr.bf16.mxu0 %v4377_v2  ;;  %v4399_v1 = vld [vmem:[%s5300_s1 + $0x238] sm:$0xff]  }
 0x229   :  { %v4008_v7 = vpop.f32.mrf.mxu1 }
 0x22a   :  { %4067 = vmatmul.mubr.msk.bf16.vlgmr.msra.gmra.mxu0 %vm888_vm0, %v787_v0 }
 0x22b   :  { %v653_v40 = vpop.f32.mrf.mxu1  ;;  %4071 = vmatpush3.bf16.msra.mxu0 %v4377_v2  ;;  %4074 = vmatprep.mubr.msk.bf16.mxu0 %vm888_vm0, %v788_v5  ;;  %v4398_v5 = vld [vmem:[%s5300_s1 + $0x220] sm:$0xff]  }
 0x22c   :  { %v790_v57 = vpack.c.bf16 %v653_v40, %v4005_v4  ;;  %4072 = vmatprep.subr.bf16.mxu0 %v4379_v6 }
 0x22d   :  { %v4009_v63 = vpop.f32.mrf.mxu1 }
 0x22e   :  { %4082 = vmatprep.mubr.msk.bf16.mxu1 %vm888_vm0, %v790_v57  ;;  %v792_v11 = vpack.c.bf16 %v4009_v63, %v4008_v7 }
 0x22f   :  { %v656_v8 = vpop.f32.mrf.mxu1  ;;  %4073 = vmatpush3.bf16.msra.mxu0 %v4379_v6 }
 0x230   :  { %v791_v9 = vpack.c.bf16 %v656_v8, %v656_v8  ;;  %4086 = vmatprep.subr.bf16.mxu0 %v4381_v59  ;;  %v4400_v8 = vld [vmem:[%s5300_s1 + $0x230] sm:$0xff]  }
 0x231   :  { %v4012_v12 = vpop.f32.mrf.mxu1 }
 0x232   :  { %4075 = vmatmul.mubr.msk.bf16.vlgmr.msra.gmra.mxu0 %vm888_vm0, %v789_v53  ;;  %4083 = vmatmul.mubr.msk.bf16.vlgmr.msra.gmra.mxu1 %vm888_vm0, %v791_v9 }
 0x233   :  { %v669_v14 = vpop.f32.mrf.mxu1  ;;  %4087 = vmatpush3.bf16.msra.mxu0 %v4381_v59  ;;  %4090 = vmatprep.mubr.msk.bf16.mxu0 %vm888_vm0, %v792_v11 }
 0x234   :  { %4095 = vmatpush3.bf16.msra.mxu1 %v4382_v46  ;;  %4088 = vmatprep.subr.bf16.mxu0 %v4383_v10  ;;  %v793_v19 = vpack.c.bf16 %v669_v14, %v669_v14 }
 0x235   :  { %v4013_v16 = vpop.f32.mrf.mxu1  ;;  %4096 = vmatprep.subr.bf16.mxu1 %v4384_v13 }
 0x236   :  { %v795_v22 = vpack.c.bf16 %v4013_v16, %v4013_v16 }
 0x237   :  { %v672_v18 = vpop.f32.mrf.mxu1  ;;  %4089 = vmatpush3.bf16.msra.mxu0 %v4383_v10 }
 0x238   :  { %v794_v20 = vpack.c.bf16 %v4012_v12, %v672_v18  ;;  %4097 = vmatpush3.bf16.msra.mxu1 %v4384_v13  ;;  %4102 = vmatprep.subr.bf16.mxu0 %v4385_v15 }
 0x239   :  { %v4016_v23 = vpop.f32.mrf.mxu1  ;;  %4110 = vmatprep.subr.bf16.mxu1 %v4387_v17 }
 0x23a   :  { %4091 = vmatmul.mubr.msk.bf16.vlgmr.msra.gmra.mxu0 %vm888_vm0, %v793_v19  ;;  %4098 = vmatprep.mubr.msk.bf16.mxu1 %vm888_vm0, %v794_v20  ;;  %v797_v31 = vpack.c.bf16 %v4016_v23, %v4016_v23 }
 0x23b   :  { %v685_v25 = vpop.f32.mrf.mxu1  ;;  %4099 = vmatmul.mubr.msk.bf16.vlgmr.msra.gmra.mxu1 %vm888_vm0, %v795_v22  ;;  %4103 = vmatpush3.bf16.msra.mxu0 %v4385_v15  ;;  %v4490_v15 = vmov 0.0   ;;  %v4407_v22 = vld [vmem:[%s5300_s1 + $0x280] sm:$0xff]  }
 0x23c   :  { %4104 = vmatprep.subr.bf16.mxu0 %v4386_v21  ;;  %4111 = vmatpush3.bf16.msra.mxu1 %v4387_v17 }
 0x23d   :  { %v4017_v27 = vpop.f32.mrf.mxu1  ;;  %4112 = vmatprep.subr.bf16.mxu1 %v4388_v24 }
 0x23f   :  { %v688_v29 = vpop.f32.mrf.mxu1  ;;  %4105 = vmatpush3.bf16.msra.mxu0 %v4386_v21 }
 0x240   :  { %v796_v30 = vpack.c.bf16 %v688_v29, %v685_v25  ;;  %4118 = vmatprep.subr.bf16.mxu0 %v4389_v26  ;;  %4113 = vmatpush3.bf16.msra.mxu1 %v4388_v24  ;;  %v4408_v24 = vld [vmem:[%s5300_s1 + $0x278] sm:$0xff]  }
 0x241   :  { %v4020_v32 = vpop.f32.mrf.mxu1  ;;  %4126 = vmatprep.subr.bf16.mxu1 %v4391_v28 }
 0x242   :  { %4106 = vmatprep.mubr.msk.bf16.mxu0 %vm888_vm0, %v796_v30  ;;  %v4411_v30 = vld [vmem:[%s5300_s1 + $0x268] sm:$0xff]  }
 0x243   :  { %v701_v36 = vpop.f32.mrf.mxu1  ;;  %4107 = vmatmul.mubr.msk.bf16.vlgmr.msra.gmra.mxu0 %vm888_vm0, %v797_v31 }
 0x244   :  { %v798_v38 = vpack.c.bf16 %v701_v36, %v4017_v27  ;;  %4119 = vmatpush3.bf16.msra.mxu0 %v4389_v26  ;;  %v4410_v27 = vld [vmem:[%s5300_s1 + $0x270] sm:$0xff]  }
 0x245   :  { %v4021_v39 = vpop.f32.mrf.mxu1  ;;  %4120 = vmatprep.subr.bf16.mxu0 %v4390_v35 }
 0x246   :  { %v800_v42 = vpack.c.bf16 %v4021_v39, %v4020_v32  ;;  %4114 = vmatprep.mubr.msk.bf16.mxu1 %vm888_vm0, %v798_v38 }
 0x247   :  { %v704_v43 = vpop.f32.mrf.mxu1 }
 0x248   :  { %v799_v44 = vpack.c.bf16 %v704_v43, %v704_v43  ;;  %4122 = vmatprep.mubr.msk.bf16.mxu0 %vm888_vm0, %v800_v42  ;;  %4121 = vmatpush3.bf16.msra.mxu0 %v4390_v35 }
 0x249   :  { %v4024_v46 = vpop.f32.mrf.mxu1  ;;  %4134 = vmatprep.subr.bf16.mxu0 %v4393_v41 }
 0x24a   :  { %4115 = vmatmul.mubr.msk.bf16.vlgmr.msra.gmra.mxu1 %vm888_vm0, %v799_v44 }
 0x24b   :  { %v717_v47 = vpop.f32.mrf.mxu1  ;;  %4127 = vmatpush3.bf16.msra.mxu1 %v4391_v28 }
 0x24c   :  { %v801_v48 = vpack.c.bf16 %v717_v47, %v717_v47  ;;  %4128 = vmatprep.subr.bf16.mxu1 %v4392_v45 }
 0x24d   :  { %v4025_v51 = vpop.f32.mrf.mxu1 }
 0x24e   :  { %4123 = vmatmul.mubr.msk.bf16.vlgmr.msra.gmra.mxu0 %vm888_vm0, %v801_v48  ;;  %v803_v56 = vpack.c.bf16 %v4025_v51, %v4025_v51 }
 0x24f   :  { %v720_v52 = vpop.f32.mrf.mxu1  ;;  %4129 = vmatpush3.bf16.msra.mxu1 %v4392_v45  ;;  %4135 = vmatpush3.bf16.msra.mxu0 %v4393_v41 }
 0x250   :  { %v802_v54 = vpack.c.bf16 %v4024_v46, %v720_v52  ;;  %4136 = vmatprep.subr.bf16.mxu0 %v4394_v49  ;;  %4142 = vmatprep.subr.bf16.mxu1 %v4395_v50 }
 0x251   :  { %v4028_v58 = vpop.f32.mrf.mxu1 }
 0x252   :  { %4130 = vmatprep.mubr.msk.bf16.mxu1 %vm888_vm0, %v802_v54  ;;  %v805_v62 = vpack.c.bf16 %v4028_v58, %v4028_v58 }
 0x253   :  { %v733_v61 = vpop.f32.mrf.mxu1  ;;  %4131 = vmatmul.mubr.msk.bf16.vlgmr.msra.gmra.mxu1 %vm888_vm0, %v803_v56  ;;  %4137 = vmatpush3.bf16.msra.mxu0 %v4394_v49 }
 0x254   :  { %4143 = vmatpush3.bf16.msra.mxu1 %v4395_v50  ;;  %4150 = vmatprep.subr.bf16.mxu0 %v4397_v55 }
 0x255   :  { %v4029_v3 = vpop.f32.mrf.mxu1  ;;  %4144 = vmatprep.subr.bf16.mxu1 %v4396_v60 }
 0x257   :  { %v736_v2 = vpop.f32.mrf.mxu1 }
 0x258   :  { %v804_v4 = vpack.c.bf16 %v736_v2, %v733_v61  ;;  %4145 = vmatpush3.bf16.msra.mxu1 %v4396_v60 }
 0x259   :  { %v4032_v0 = vpop.f32.mrf.mxu1  ;;  %4158 = vmatprep.subr.bf16.mxu1 %v4399_v1 }
 0x25a   :  { %4138 = vmatprep.mubr.msk.bf16.mxu0 %vm888_vm0, %v804_v4 }
 0x25b   :  { %v749_v6 = vpop.f32.mrf.mxu1  ;;  %4139 = vmatmul.mubr.msk.bf16.vlgmr.msra.gmra.mxu0 %vm888_vm0, %v805_v62 }
 0x25c   :  { %v806_v7 = vpack.c.bf16 %v749_v6, %v4029_v3  ;;  %4151 = vmatpush3.bf16.msra.mxu0 %v4397_v55 }
 0x25d   :  { %v4033_v40 = vpop.f32.mrf.mxu1  ;;  %4152 = vmatprep.subr.bf16.mxu0 %v4398_v5 }
 0x25e   :  { %v808_v57 = vpack.c.bf16 %v4033_v40, %v4032_v0  ;;  %4146 = vmatprep.mubr.msk.bf16.mxu1 %vm888_vm0, %v806_v7 }
 0x25f   :  { %v752_v59 = vpop.f32.mrf.mxu1 }
 0x260   :  { %v807_v63 = vpack.c.bf16 %v752_v59, %v752_v59  ;;  %4154 = vmatprep.mubr.msk.bf16.mxu0 %vm888_vm0, %v808_v57  ;;  %4153 = vmatpush3.bf16.msra.mxu0 %v4398_v5 }
 0x261   :  { %v4036_v53 = vpop.f32.mrf.mxu1  ;;  %4166 = vmatprep.subr.bf16.mxu0 %v4490_v15 }
 0x262   :  { %4147 = vmatmul.mubr.msk.bf16.vlgmr.msra.gmra.mxu1 %vm888_vm0, %v807_v63 }
 0x263   :  { %v765_v9 = vpop.f32.mrf.mxu1  ;;  %4159 = vmatpush3.bf16.msra.mxu1 %v4399_v1 }
 0x264   :  { %v809_v10 = vpack.c.bf16 %v765_v9, %v765_v9  ;;  %4160 = vmatprep.subr.bf16.mxu1 %v4400_v8 }
 0x265   :  { %v4037_v11 = vpop.f32.mrf.mxu1 }
 0x266   :  { %4155 = vmatmul.mubr.msk.bf16.vlgmr.msra.gmra.mxu0 %vm888_vm0, %v809_v10  ;;  %v811_v14 = vpack.c.bf16 %v4037_v11, %v4037_v11 }
 0x267   :  { %v768_v12 = vpop.f32.mrf.mxu1  ;;  %4161 = vmatpush3.bf16.msra.mxu1 %v4400_v8  ;;  %4170 = vmatprep.mubr.msk.bf16.mxu0 %vm4491_vm1, %v4490_v15 }
 0x268   :  { %v810_v13 = vpack.c.bf16 %v4036_v53, %v768_v12  ;;  %4190 = vmatprep.subr.bf16.mxu1 %v4490_v15 }
 0x26a   :  { %4162 = vmatprep.mubr.msk.bf16.mxu1 %vm888_vm0, %v810_v13 }
 0x26b   :  { %4163 = vmatmul.mubr.msk.bf16.vlgmr.msra.gmra.mxu1 %vm888_vm0, %v811_v14 }
 0x26c   :  { %4198 = vmatprep.mubr.msk.bf16.mxu1 %vm4491_vm1, %v4490_v15  ;;  %4191 = vmatpush3.bf16.msra.mxu1 %v4407_v22 }
 0x26d   :  { %4192 = vmatprep.subr.bf16.mxu1 %v4490_v15 }
 0x270   :  { %4193 = vmatpush3.bf16.msra.mxu1 %v4408_v24 }
 0x271   :  { %4194 = vmatprep.subr.bf16.mxu1 %v4490_v15 }
 0x274   :  { %4195 = vmatpush3.bf16.msra.mxu1 %v4410_v27 }
 0x275   :  { %4196 = vmatprep.subr.bf16.mxu1 %v4490_v15 }
 0x278   :  { %4197 = vmatpush3.bf16.msra.mxu1 %v4411_v30 }
 0x279   :  { %4202 = vmatprep.subr.bf16.mxu1 %v4490_v15 }
 0x2d3   :  { %v4044_v16 = vpop.f32.mrf.mxu1 }
 0x2d4   :  { %v1996_v2 = vsel %vm1933_vm2, %v4044_v16, 0.0 }
 0x2d5   :  { %v929_v17 = vpop.f32.mrf.mxu1 }
 0x2d6   :  { %v1934_v7 = vsel %vm1933_vm2, %v929_v17, 0.0 }
 0x2d7   :  { %v4045_v18 = vpop.f32.mrf.mxu1 }
 0x2d9   :  { %v932_v36 = vpop.f32.mrf.mxu1 }
 0x2da   :  { %v4052_v19 = vpop.f32.mrf.mxu0  ;;  %v1965_v17 = vsel %vm1933_vm2, %v932_v36, 0.0 }
 0x2db   :  { %v1997_v3 = vsel %vm1933_vm2, %v4052_v19, 0.0 }
 0x2dc   :  { %v995_v20 = vpop.f32.mrf.mxu0  ;;  %v1998_v6 = vadd.f32 %v1997_v3, %v1996_v2 }
 0x2dd   :  { %v1935_v4 = vsel %vm1933_vm2, %v995_v20, 0.0 }
 0x2de   :  { %v4053_v21 = vpop.f32.mrf.mxu0  ;;  %v1936_v8 = vadd.f32 %v1935_v4, %v1934_v7 }
 0x2e0   :  { %v998_v23 = vpop.f32.mrf.mxu0 }
 0x2e1   :  { %v1966_v9 = vsel %vm1933_vm2, %v998_v23, 0.0 }
 0x2e2   :  { %v4060_v25 = vpop.f32.mrf.mxu0  ;;  %v1967_v21 = vadd.f32 %v1966_v9, %v1965_v17 }
 0x2e3   :  { %v1999_v62 = vsel %vm1933_vm2, %v4060_v25, 0.0 }
 0x2e4   :  { %v1061_v26 = vpop.f32.mrf.mxu0  ;;  %v2000_v53 = vadd.f32 %v1999_v62, %v1998_v6 }
 0x2e5   :  { %v1937_v40 = vsel %vm1933_vm2, %v1061_v26, 0.0 }
 0x2e6   :  { %v4061_v28 = vpop.f32.mrf.mxu0  ;;  %v1938_v14 = vadd.f32 %v1937_v40, %v1936_v8 }
 0x2e8   :  { %v1064_v29 = vpop.f32.mrf.mxu0 }
 0x2e9   :  { %v1968_v18 = vsel %vm1933_vm2, %v1064_v29, 0.0 }
 0x2ea   :  { %v4068_v31 = vpop.f32.mrf.mxu0  ;;  %v1969_v26 = vadd.f32 %v1968_v18, %v1967_v21 }
 0x2eb   :  { %v2001_v57 = vsel %vm1933_vm2, %v4068_v31, 0.0 }
 0x2ec   :  { %v1127_v32 = vpop.f32.mrf.mxu0  ;;  %v2002_v16 = vadd.f32 %v2001_v57, %v2000_v53 }
 0x2ed   :  { %v1939_v10 = vsel %vm1933_vm2, %v1127_v32, 0.0 }
 0x2ee   :  { %v4069_v35 = vpop.f32.mrf.mxu0  ;;  %v1940_v22 = vadd.f32 %v1939_v10, %v1938_v14 }
 0x2f0   :  { %v1130_v38 = vpop.f32.mrf.mxu0 }
 0x2f1   :  { %v1970_v23 = vsel %vm1933_vm2, %v1130_v38, 0.0 }
 0x2f2   :  { %v4076_v39 = vpop.f32.mrf.mxu0  ;;  %v4084_v41 = vpop.f32.mrf.mxu1  ;;  %v1971_v35 = vadd.f32 %v1970_v23, %v1969_v26 }
 0x2f3   :  { %v2003_v11 = vsel %vm1933_vm2, %v4076_v39, 0.0  ;;  %v2005_v30 = vsel %vm1933_vm2, %v4084_v41, 0.0 }
 0x2f4   :  { %v1193_v42 = vpop.f32.mrf.mxu0  ;;  %v1259_v43 = vpop.f32.mrf.mxu1  ;;  %v2004_v24 = vadd.f32 %v2003_v11, %v2002_v16 }
 0x2f5   :  { %v1941_v19 = vsel %vm1933_vm2, %v1193_v42, 0.0  ;;  %v1943_v39 = vsel %vm1933_vm2, %v1259_v43, 0.0 }
 0x2f6   :  { %v4077_v44 = vpop.f32.mrf.mxu0  ;;  %v4085_v45 = vpop.f32.mrf.mxu1  ;;  %v1942_v27 = vadd.f32 %v1941_v19, %v1940_v22  ;;  %v2006_v29 = vadd.f32 %v2005_v30, %v2004_v24 }
 0x2f8   :  { %v1196_v46 = vpop.f32.mrf.mxu0  ;;  %v1262_v47 = vpop.f32.mrf.mxu1  ;;  %v1944_v44 = vadd.f32 %v1943_v39, %v1942_v27 }
 0x2f9   :  { %v1972_v31 = vsel %vm1933_vm2, %v1196_v46, 0.0  ;;  %v1974_v41 = vsel %vm1933_vm2, %v1262_v47, 0.0 }
 0x2fa   :  { %v4092_v48 = vpop.f32.mrf.mxu0  ;;  %v1973_v45 = vadd.f32 %v1972_v31, %v1971_v35 }
 0x2fb   :  { %v4100_v49 = vpop.f32.mrf.mxu1  ;;  %v2007_v32 = vsel %vm1933_vm2, %v4092_v48, 0.0 }
 0x2fc   :  { %v1325_v50 = vpop.f32.mrf.mxu0  ;;  %v1975_v4 = vadd.f32 %v1974_v41, %v1973_v45 }
 0x2fd   :  { %v1391_v51 = vpop.f32.mrf.mxu1  ;;  %v1945_v42 = vsel %vm1933_vm2, %v1325_v50, 0.0 }
 0x2fe   :  { %v4093_v52 = vpop.f32.mrf.mxu0  ;;  %v1947_v46 = vsel %vm1933_vm2, %v1391_v51, 0.0 }
 0x2ff   :  { %v4101_v54 = vpop.f32.mrf.mxu1  ;;  %v2008_v52 = vadd.f32 %v2007_v32, %v2006_v29 }
 0x300   :  { %v1328_v55 = vpop.f32.mrf.mxu0  ;;  %v2009_v54 = vsel %vm1933_vm2, %v4100_v49, 0.0 }
 0x301   :  { %v4869_v61 = vpop.f32.mrf.mxu1  ;;  %v1976_v48 = vsel %vm1933_vm2, %v1328_v55, 0.0  ;;  %v2010_v43 = vadd.f32 %v2009_v54, %v2008_v52 }
 0x302   :  { %v1977_v40 = vadd.f32 %v1976_v48, %v1975_v4  ;;  %v1978_v47 = vsel %vm1933_vm2, %v4869_v61, 0.0 }
 0x303   :  { %v4108_v56 = vpop.f32.mrf.mxu0 }
 0x304   :  { %v2011_v2 = vsel %vm1933_vm2, %v4108_v56, 0.0  ;;  %v1979_v10 = vadd.f32 %v1978_v47, %v1977_v40 }
 0x305   :  { %v1457_v58 = vpop.f32.mrf.mxu0  ;;  %v2012_v49 = vadd.f32 %v2011_v2, %v2010_v43 }
 0x306   :  { %v1949_v50 = vsel %vm1933_vm2, %v1457_v58, 0.0 }
 0x307   :  { %v4109_v60 = vpop.f32.mrf.mxu0 }
 0x308   :  { %v1946_v60 = vadd.f32 %v1945_v42, %v1944_v44 }
 0x309   :  { %v4875_v0 = vpop.f32.mrf.mxu0 }
 0x30a   :  { %v4116_v1 = vpop.f32.mrf.mxu1  ;;  %v1948_v7 = vadd.f32 %v1947_v46, %v1946_v60  ;;  %v1980_v53 = vsel %vm1933_vm2, %v4875_v0, 0.0  ;;  %v2027_v0 = vld [vmem:[%s5300_s1 + $0x510] sm:$0x1] }
 0x30b   :  { %v2013_v6 = vsel %vm1933_vm2, %v4116_v1, 0.0  ;;  %v1981_v18 = vadd.f32 %v1980_v53, %v1979_v10  ;;  %v2028_v27 = vunpack.c.l.bf16 %v2027_v0  ;;  %v4405_v0 = vld [vmem:[%s5300_s1 + $0x260] ss:$0 sps:$4 sm:$0xff]  }
 0x30c   :  { %v1523_v5 = vpop.f32.mrf.mxu1  ;;  %v1950_v56 = vadd.f32 %v1949_v50, %v1948_v7  ;;  %v2014_v8 = vadd.f32 %v2013_v6, %v2012_v49 }
 0x30d   :  { %v1951_v51 = vsel %vm1933_vm2, %v1523_v5, 0.0 }
 0x30e   :  { %v4117_v59 = vpop.f32.mrf.mxu1  ;;  %v4124_v63 = vpop.f32.mrf.mxu0  ;;  %v1952_v11 = vadd.f32 %v1951_v51, %v1950_v56 }
 0x30f   :  { %v2015_v55 = vsel %vm1933_vm2, %v4124_v63, 0.0 }
 0x310   :  { %v1526_v12 = vpop.f32.mrf.mxu1  ;;  %v1589_v13 = vpop.f32.mrf.mxu0  ;;  %v2016_v14 = vadd.f32 %v2015_v55, %v2014_v8 }
 0x311   :  { %v1953_v58 = vsel %vm1933_vm2, %v1589_v13, 0.0  ;;  %v1982_v61 = vsel %vm1933_vm2, %v1526_v12, 0.0 }
 0x312   :  { %v4125_v20 = vpop.f32.mrf.mxu0  ;;  %v1954_v13 = vadd.f32 %v1953_v58, %v1952_v11 }
 0x313   :  { %v4132_v25 = vpop.f32.mrf.mxu1 }
 0x314   :  { %v1592_v38 = vpop.f32.mrf.mxu0  ;;  %v2017_v1 = vsel %vm1933_vm2, %v4132_v25, 0.0  ;;  %v1983_v25 = vadd.f32 %v1982_v61, %v1981_v18  ;;  %v4406_v61 = vld [vmem:[%s5300_s1 + $0x2c0] sm:$0xff]   ;;  %v4412_v18 = vld [vmem:[%s5300_s1 + $0x2b0] sm:$0xff]  }
 0x315   :  { %v1655_v28 = vpop.f32.mrf.mxu1  ;;  %v2018_v19 = vadd.f32 %v2017_v1, %v2016_v14  ;;  %v1984_v20 = vsel %vm1933_vm2, %v1592_v38, 0.0  ;;  %v4401_v14 = vld [vmem:[%s5300_s1 + $0x240] sm:$0xff]  }
 0x316   :  { %v1955_v5 = vsel %vm1933_vm2, %v1655_v28, 0.0  ;;  %v1985_v29 = vadd.f32 %v1984_v20, %v1983_v25  ;;  %v4413_v20 = vld [vmem:[%s5300_s1 + $0x2a0] sm:$0xff]  }
 0x317   :  { %v4133_v36 = vpop.f32.mrf.mxu1  ;;  %v1956_v23 = vadd.f32 %v1955_v5, %v1954_v13  ;;  %v4409_v5 = vld [vmem:[%s5300_s1 + $0x2b8] sm:$0xff]   ;;  %v4416_v13 = vld [vmem:[%s5300_s1 + $0x2a8] sm:$0xff]  }
 0x319   :  { %v1658_v59 = vpop.f32.mrf.mxu1 }
 0x31a   :  { %v1986_v28 = vsel %vm1933_vm2, %v1658_v59, 0.0 }
 0x31b   :  { %v4140_v3 = vpop.f32.mrf.mxu0  ;;  %v1987_v52 = vadd.f32 %v1986_v28, %v1985_v29 }
 0x31c   :  { %v2019_v63 = vsel %vm1933_vm2, %v4140_v3, 0.0  ;;  %v2032_v3 = vrot.slane %v2028_v27, %v4615_v37  ;;  %v4418_v27 = vld [vmem:[%s5300_s1 + $0x300] sm:$0xff]  }
 0x31d   :  { %v1721_v62 = vpop.f32.mrf.mxu0  ;;  %v2020_v26 = vadd.f32 %v2019_v63, %v2018_v19  ;;  %v4402_v63 = vld [vmem:[%s5300_s1 + $0x248] sm:$0xff]  }
 0x31e   :  { %v1957_v21 = vsel %vm1933_vm2, %v1721_v62, 0.0 }
 0x31f   :  { %v4141_v57 = vpop.f32.mrf.mxu0  ;;  %v1958_v36 = vadd.f32 %v1957_v21, %v1956_v23  ;;  %v4415_v23 = vld [vmem:[%s5300_s1 + $0x290] sm:$0xff]  }
 0x321   :  { %v1724_v16 = vpop.f32.mrf.mxu0 }
 0x322   :  { %v4148_v9 = vpop.f32.mrf.mxu1  ;;  %v1988_v42 = vsel %vm1933_vm2, %v1724_v16, 0.0  ;;  %v4403_v16 = vld [vmem:[%s5300_s1 + $0x250] sm:$0xff]  }
 0x323   :  { %v2021_v22 = vsel %vm1933_vm2, %v4148_v9, 0.0  ;;  %v1989_v2 = vadd.f32 %v1988_v42, %v1987_v52  ;;  %v4421_v52 = vld [vmem:[%s5300_s1 + $0x2d8] sm:$0xff]  }
 0x324   :  { %v1787_v17 = vpop.f32.mrf.mxu1  ;;  %v2022_v39 = vadd.f32 %v2021_v22, %v2020_v26 }
 0x325   :  { %v1959_v30 = vsel %vm1933_vm2, %v1787_v17, 0.0  ;;  %v4404_v17 = vld [vmem:[%s5300_s1 + $0x258] sm:$0xff]  }
 0x326   :  { %v4149_v12 = vpop.f32.mrf.mxu1  ;;  %v4156_v24 = vpop.f32.mrf.mxu0  ;;  %v1960_v38 = vadd.f32 %v1959_v30, %v1958_v36  ;;  %v4419_v36 = vld [vmem:[%s5300_s1 + $0x2e0] sm:$0xff]  }
 0x327   :  { %v2023_v31 = vsel %vm1933_vm2, %v4156_v24, 0.0  ;;  %v4414_v24 = vld [vmem:[%s5300_s1 + $0x298] sm:$0xff]  }
 0x328   :  { %v1790_v32 = vpop.f32.mrf.mxu1  ;;  %v1853_v35 = vpop.f32.mrf.mxu0  ;;  %v2024_v54 = vadd.f32 %v2023_v31, %v2022_v39  ;;  %v4417_v31 = vld [vmem:[%s5300_s1 + $0x288] sm:$0xff]   ;;  %v4422_v39 = vld [vmem:[%s5300_s1 + $0x2f0] sm:$0xff]  }
 0x329   :  { %v1961_v44 = vsel %vm1933_vm2, %v1853_v35, 0.0  ;;  %v1990_v41 = vsel %vm1933_vm2, %v1790_v32, 0.0  ;;  %v4420_v35 = vld [vmem:[%s5300_s1 + $0x2f8] sm:$0xff]  }
 0x32a   :  { %v4157_v45 = vpop.f32.mrf.mxu0  ;;  %v1962_v4 = vadd.f32 %v1961_v44, %v1960_v38  ;;  %v1991_v7 = vadd.f32 %v1990_v41, %v1989_v2  ;;  %v4424_v38 = vld [vmem:[%s5300_s1 + $0x2e8] sm:$0xff]   ;;  %v4423_v41 = vld [vmem:[%s5300_s1 + $0x2d0] sm:$0xff]  }
 0x32b   :  { %v4164_v60 = vpop.f32.mrf.mxu1 }
 0x32c   :  { %v2025_v46 = vsel %vm1933_vm2, %v4164_v60, 0.0  ;;  %v1856_v48 = vpop.f32.mrf.mxu0 }
 0x32d   :  { %v2026_v43 = vadd.f32 %v2025_v46, %v2024_v54  ;;  %v1919_v62 = vpop.f32.mrf.mxu1  ;;  %v1992_v50 = vsel %vm1933_vm2, %v1856_v48, 0.0  ;;  %v4426_v46 = vld [vmem:[%s5300_s1 + $0x340] sm:$0xff]  }
 0x32e   :  { %v1963_v6 = vsel %vm1933_vm2, %v1919_v62, 0.0  ;;  %v1993_v51 = vadd.f32 %v1992_v50, %v1991_v7  ;;  %v4430_v7 = vld [vmem:[%s5300_s1 + $0x330] sm:$0xff]  }
 0x32f   :  { %v2035_v40 = vadd.f32 %v2032_v3, %v2026_v43  ;;  %v1964_v49 = vadd.f32 %v1963_v6, %v1962_v4  ;;  %v4165_v57 = vpop.f32.mrf.mxu1  ;;  %v4425_v4 = vld [vmem:[%s5300_s1 + $0x2c8] sm:$0xff]   ;;  %v4428_v43 = vld [vmem:[%s5300_s1 + $0x338] sm:$0xff]   ;;  %v4427_v6 = vld [vmem:[%s5300_s1 + $0x320] sm:$0xff]  }
 0x331   :  { %v2038_v47 = vmax.f32 %v2035_v40, 0.0  ;;  %v1922_v55 = vpop.f32.mrf.mxu1  ;;  %v2033_v8 = vadd.f32 %v2032_v3, %v1964_v49 }
 0x332   :  { %v1994_v59 = vsel %vm1933_vm2, %v1922_v55, 0.0 }
 0x333   :  { %v2040_v56 = vpack.c.bf16 %v2038_v47, %v2038_v47  ;;  %v1995_v53 = vadd.f32 %v1994_v59, %v1993_v51  ;;  %v2036_v9 = vmax.f32 %v2033_v8, 0.0  ;;  %v4429_v47 = vld [vmem:[%s5300_s1 + $0x318] sm:$0xff]   ;;  %v4432_v51 = vld [vmem:[%s5300_s1 + $0x328] sm:$0xff]   ;;  %v4431_v8 = vld [vmem:[%s5300_s1 + $0x310] sm:$0xff]  }
 0x335   :  { %v2034_v58 = vadd.f32 %v2032_v3, %v1995_v53  ;;  %v2091_v1 = vsel %vm2089_vm3, %v2040_v56, 0  ;;  %v4434_v53 = vld [vmem:[%s5300_s1 + $0x380] sm:$0xff]  }
 0x336   :  { %4167 = vmatpush3.bf16.msra.mxu0 %v2091_v1  ;;  %v4436_v1 = vld [vmem:[%s5300_s1 + $0x378] sm:$0xff]  }
 0x337   :  { %v2037_v10 = vmax.f32 %v2034_v58, 0.0  ;;  %4168 = vmatprep.subr.bf16.mxu0 %v4490_v15  ;;  %v4433_v58 = vld [vmem:[%s5300_s1 + $0x308] sm:$0xff]  }
 0x339   :  { %v2039_v11 = vpack.c.bf16 %v2037_v10, %v2036_v9  ;;  %v4435_v9 = vld [vmem:[%s5300_s1 + $0x360] sm:$0xff]   ;;  %v4438_v10 = vld [vmem:[%s5300_s1 + $0x370] sm:$0xff]  }
 0x33b   :  { %4169 = vmatpush3.bf16.msra.mxu0 %v2039_v11 }
 0x33c   :  { %4214 = vmatprep.subr.bf16.mxu0 %v4490_v15 }
 0x33e   :  { %4171 = vmatmul.mubr.msk.bf16.vlgmr.msra.gmra.mxu0 %vm2073_vm4, %v4401_v14  ;;  %v4437_v14 = vld [vmem:[%s5300_s1 + $0x358] sm:$0xff]  }
 0x33f   :  { %4174 = vmatprep.mubr.msk.bf16.mxu0 %vm4491_vm1, %v4490_v15  ;;  %4215 = vmatpush3.bf16.msra.mxu0 %v4406_v61  ;;  %v4440_v61 = vld [vmem:[%s5300_s1 + $0x368] sm:$0xff]  }
 0x340   :  { %4216 = vmatprep.subr.bf16.mxu0 %v4490_v15 }
 0x343   :  { %4217 = vmatpush3.bf16.msra.mxu0 %v4409_v5 }
 0x344   :  { %4218 = vmatprep.subr.bf16.mxu0 %v4490_v15 }
 0x346   :  { %4175 = vmatmul.mubr.msk.bf16.gmra.mxu0 %vm2073_vm4, %v4402_v63  ;;  %v4439_v63 = vld [vmem:[%s5300_s1 + $0x350] sm:$0xff]  }
 0x347   :  { %4178 = vmatprep.mubr.msk.bf16.mxu0 %vm4491_vm1, %v4490_v15  ;;  %4219 = vmatpush3.bf16.msra.mxu0 %v4412_v18  ;;  %v4443_v18 = vld [vmem:[%s5300_s1 + $0x400] sm:$0xff]  }
 0x348   :  { %4220 = vmatprep.subr.bf16.mxu0 %v4490_v15 }
 0x34b   :  { %4221 = vmatpush3.bf16.msra.mxu0 %v4416_v13  ;;  %v4445_v13 = vld [vmem:[%s5300_s1 + $0x3e0] sm:$0xff]  }
 0x34c   :  { %4238 = vmatprep.subr.bf16.mxu0 %v4490_v15 }
 0x34e   :  { %4179 = vmatmul.mubr.msk.bf16.gmra.mxu0 %vm2073_vm4, %v4403_v16  ;;  %v4441_v16 = vld [vmem:[%s5300_s1 + $0x348] sm:$0xff]  }
 0x34f   :  { %4182 = vmatprep.mubr.msk.bf16.mxu0 %vm4491_vm1, %v4490_v15 }
 0x356   :  { %4183 = vmatmul.mubr.msk.bf16.gmra.mxu0 %vm2073_vm4, %v4404_v17 }
 0x357   :  { %4186 = vmatprep.mubr.msk.bf16.mxu0 %vm4491_vm1, %v4490_v15 }
 0x35e   :  { %4187 = vmatmul.mubr.msk.bf16.gmra.mxu0 %vm2073_vm4, %v4405_v0  ;;  %v4442_v0 = vld [vmem:[%s5300_s1 + $0x3c0] sm:$0xff]  }
 0x35f   :  { %4222 = vmatprep.mubr.msk.bf16.mxu0 %vm4491_vm1, %v4490_v15 }
 0x3fe   :  { %v2127_v19 = vpop.f32.mrf.mxu0 }
 0x3ff   :  { %v2165_v21 = vpack.c.bf16 %v2127_v19, %v2127_v19  ;;  %v4446_v19 = vld [vmem:[%s5300_s1 + $0x3b8] sm:$0xff]  }
 0x400   :  { %v4172_v22 = vpop.f32.mrf.mxu0 }
 0x401   :  { %4199 = vmatmul.mubr.msk.bf16.vlgmr.msra.gmra.mxu1 %vm1933_vm2, %v2165_v21  ;;  %v4448_v21 = vld [vmem:[%s5300_s1 + $0x398] sm:$0xff]  }
 0x402   :  { %4203 = vmatpush3.bf16.msra.mxu1 %v4413_v20  ;;  %v2130_v12 = vpop.f32.mrf.mxu0  ;;  %4210 = vmatprep.mubr.msk.bf16.mxu1 %vm4491_vm1, %v4490_v15  ;;  %v4447_v20 = vld [vmem:[%s5300_s1 + $0x3f8] sm:$0xff]  }
 0x403   :  { %4204 = vmatprep.subr.bf16.mxu1 %v4490_v15  ;;  %v2166_v44 = vpack.c.bf16 %v2130_v12, %v2130_v12  ;;  %v4449_v22 = vld [vmem:[%s5300_s1 + $0x3d8] sm:$0xff]   ;;  %v4450_v12 = vld [vmem:[%s5300_s1 + $0x3b0] sm:$0xff]  }
 0x404   :  { %v4173_v25 = vpop.f32.mrf.mxu0 }
 0x405   :  { %v4452_v25 = vld [vmem:[%s5300_s1 + $0x390] sm:$0xff]  }
 0x406   :  { %4205 = vmatpush3.bf16.msra.mxu1 %v4414_v24  ;;  %v2135_v26 = vpop.f32.mrf.mxu0  ;;  %v4451_v24 = vld [vmem:[%s5300_s1 + $0x3f0] sm:$0xff]  }
 0x407   :  { %4206 = vmatprep.subr.bf16.mxu1 %v4490_v15  ;;  %v2167_v28 = vpack.c.bf16 %v2135_v26, %v2135_v26  ;;  %v4454_v26 = vld [vmem:[%s5300_s1 + $0x3a8] sm:$0xff]  }
 0x408   :  { %v4176_v30 = vpop.f32.mrf.mxu0 }
 0x409   :  { %4223 = vmatmul.mubr.msk.bf16.vlgmr.msra.gmra.mxu0 %vm1933_vm2, %v2167_v28  ;;  %v4456_v28 = vld [vmem:[%s5300_s1 + $0x388] sm:$0xff]  }
 0x40a   :  { %4207 = vmatpush3.bf16.msra.mxu1 %v4415_v23  ;;  %4239 = vmatpush3.bf16.msra.mxu0 %v4418_v27  ;;  %v2138_v32 = vpop.f32.mrf.mxu0  ;;  %v4453_v23 = vld [vmem:[%s5300_s1 + $0x3d0] sm:$0xff]   ;;  %v4455_v27 = vld [vmem:[%s5300_s1 + $0x3e8] sm:$0xff]  }
 0x40b   :  { %4208 = vmatprep.subr.bf16.mxu1 %v4490_v15  ;;  %4240 = vmatprep.subr.bf16.mxu0 %v4490_v15  ;;  %v2168_v49 = vpack.c.bf16 %v2138_v32, %v2138_v32  ;;  %v4457_v30 = vld [vmem:[%s5300_s1 + $0x3c8] sm:$0xff]   ;;  %v4458_v32 = vld [vmem:[%s5300_s1 + $0x480] sm:$0xff]  }
 0x40c   :  { %v4177_v29 = vpop.f32.mrf.mxu0  ;;  %4246 = vmatprep.mubr.msk.bf16.mxu0 %vm4491_vm1, %v4490_v15 }
 0x40e   :  { %4209 = vmatpush3.bf16.msra.mxu1 %v4417_v31  ;;  %4241 = vmatpush3.bf16.msra.mxu0 %v4420_v35  ;;  %v2143_v42 = vpop.f32.mrf.mxu0  ;;  %v4492_v31 = vmov 0   ;;  %v4459_v35 = vld [vmem:[%s5300_s1 + $0x500] sm:$0xff]  }
 0x40f   :  { %4226 = vmatprep.subr.bf16.mxu1 %v4490_v15  ;;  %4242 = vmatprep.subr.bf16.mxu0 %v4490_v15  ;;  %v2169_v3 = vpack.c.bf16 %v2143_v42, %v2143_v42 }
 0x410   :  { %v4180_v45 = vpop.f32.mrf.mxu0 }
 0x411   :  { %4211 = vmatmul.mubr.msk.bf16.vlgmr.msra.gmra.mxu1 %vm1933_vm2, %v2166_v44 }
 0x412   :  { %4227 = vmatpush3.bf16.msra.mxu1 %v4419_v36  ;;  %4243 = vmatpush3.bf16.msra.mxu0 %v4422_v39  ;;  %v5018_v54 = vpop.f32.mrf.mxu0 }
 0x413   :  { %4228 = vmatprep.subr.bf16.mxu1 %v4490_v15  ;;  %4244 = vmatprep.subr.bf16.mxu0 %v4490_v15  ;;  %v2170_v11 = vpack.c.bf16 %v5018_v54, %v5018_v54 }
 0x414   :  { %4234 = vmatprep.mubr.msk.bf16.mxu1 %vm4491_vm1, %v4490_v15  ;;  %v4181_v60 = vpop.f32.mrf.mxu0 }
 0x416   :  { %4229 = vmatpush3.bf16.msra.mxu1 %v4421_v52  ;;  %4245 = vmatpush3.bf16.msra.mxu0 %v4424_v38  ;;  %v2151_v48 = vpop.f32.mrf.mxu0 }
 0x417   :  { %4230 = vmatprep.subr.bf16.mxu1 %v4490_v15  ;;  %4262 = vmatprep.subr.bf16.mxu0 %v4490_v15  ;;  %v2171_v56 = vpack.c.bf16 %v2151_v48, %v2151_v48 }
 0x418   :  { %v4184_v2 = vpop.f32.mrf.mxu0 }
 0x419   :  { %4247 = vmatmul.mubr.msk.bf16.vlgmr.msra.gmra.mxu0 %vm1933_vm2, %v2169_v3 }
 0x41a   :  { %4231 = vmatpush3.bf16.msra.mxu1 %v4423_v41  ;;  %4263 = vmatpush3.bf16.msra.mxu0 %v4426_v46  ;;  %v5039_v62 = vpop.f32.mrf.mxu0 }
 0x41b   :  { %4232 = vmatprep.subr.bf16.mxu1 %v4490_v15  ;;  %4264 = vmatprep.subr.bf16.mxu0 %v4490_v15  ;;  %v2172_v17 = vpack.c.bf16 %v5039_v62, %v5039_v62 }
 0x41c   :  { %4270 = vmatprep.mubr.msk.bf16.mxu0 %vm4491_vm1, %v4490_v15  ;;  %v4185_v50 = vpop.f32.mrf.mxu0 }
 0x41e   :  { %4233 = vmatpush3.bf16.msra.mxu1 %v4425_v4  ;;  %4265 = vmatpush3.bf16.msra.mxu0 %v4428_v43  ;;  %v2159_v40 = vpop.f32.mrf.mxu0 }
 0x41f   :  { %4250 = vmatprep.subr.bf16.mxu1 %v4490_v15  ;;  %4266 = vmatprep.subr.bf16.mxu0 %v4490_v15  ;;  %v2173_v5 = vpack.c.bf16 %v2159_v40, %v2159_v40 }
 0x420   :  { %v4188_v57 = vpop.f32.mrf.mxu0 }
 0x421   :  { %4235 = vmatmul.mubr.msk.bf16.vlgmr.msra.gmra.mxu1 %vm1933_vm2, %v2168_v49 }
 0x422   :  { %4251 = vmatpush3.bf16.msra.mxu1 %v4427_v6  ;;  %4267 = vmatpush3.bf16.msra.mxu0 %v4430_v7  ;;  %v2162_v55 = vpop.f32.mrf.mxu0 }
 0x423   :  { %4252 = vmatprep.subr.bf16.mxu1 %v4490_v15  ;;  %4268 = vmatprep.subr.bf16.mxu0 %v4490_v15 }
 0x424   :  { %4258 = vmatprep.mubr.msk.bf16.mxu1 %vm4491_vm1, %v4490_v15  ;;  %v4189_v59 = vpop.f32.mrf.mxu0 }
 0x426   :  { %4253 = vmatpush3.bf16.msra.mxu1 %v4429_v47  ;;  %4269 = vmatpush3.bf16.msra.mxu0 %v4432_v51 }
 0x427   :  { %4254 = vmatprep.subr.bf16.mxu1 %v4490_v15  ;;  %4286 = vmatprep.subr.bf16.mxu0 %v4490_v15 }
 0x429   :  { %4271 = vmatmul.mubr.msk.bf16.vlgmr.msra.gmra.mxu0 %vm1933_vm2, %v2171_v56 }
 0x42a   :  { %4255 = vmatpush3.bf16.msra.mxu1 %v4431_v8  ;;  %4287 = vmatpush3.bf16.msra.mxu0 %v4434_v53 }
 0x42b   :  { %4256 = vmatprep.subr.bf16.mxu1 %v4490_v15  ;;  %4288 = vmatprep.subr.bf16.mxu0 %v4490_v15 }
 0x42c   :  { %4294 = vmatprep.mubr.msk.bf16.mxu0 %vm4491_vm1, %v4490_v15 }
 0x42e   :  { %4257 = vmatpush3.bf16.msra.mxu1 %v4433_v58  ;;  %4289 = vmatpush3.bf16.msra.mxu0 %v4436_v1 }
 0x42f   :  { %4274 = vmatprep.subr.bf16.mxu1 %v4490_v15  ;;  %4290 = vmatprep.subr.bf16.mxu0 %v4490_v15 }
 0x431   :  { %4259 = vmatmul.mubr.msk.bf16.vlgmr.msra.gmra.mxu1 %vm1933_vm2, %v2170_v11 }
 0x432   :  { %4275 = vmatpush3.bf16.msra.mxu1 %v4435_v9  ;;  %4291 = vmatpush3.bf16.msra.mxu0 %v4438_v10 }
 0x433   :  { %4276 = vmatprep.subr.bf16.mxu1 %v4490_v15  ;;  %4292 = vmatprep.subr.bf16.mxu0 %v4490_v15 }
 0x434   :  { %4282 = vmatprep.mubr.msk.bf16.mxu1 %vm4491_vm1, %v4490_v15 }
 0x436   :  { %4277 = vmatpush3.bf16.msra.mxu1 %v4437_v14  ;;  %4293 = vmatpush3.bf16.msra.mxu0 %v4440_v61 }
 0x437   :  { %4278 = vmatprep.subr.bf16.mxu1 %v4490_v15  ;;  %3079 = vmatprep.subr.bf16.mxu0 %v4443_v18 }
 0x439   :  { %4295 = vmatmul.mubr.msk.bf16.vlgmr.msra.gmra.mxu0 %vm1933_vm2, %v2173_v5 }
 0x43a   :  { %4279 = vmatpush3.bf16.msra.mxu1 %v4439_v63  ;;  %3080 = vmatpush1.bf16.msra.mxu0 %v4445_v13 }
 0x43b   :  { %4280 = vmatprep.subr.bf16.mxu1 %v4490_v15  ;;  %v4444_v15 = vld [vmem:[%s5300_s1 + $0x3a0] sm:$0xff]   ;;  %3081 = vmatprep.subr.bf16.mxu0 %v4447_v20 }
 0x43c   :  { %3103 = vmatprep.mubr.bf16.mxu0 %v4492_v31 }
 0x43e   :  { %4281 = vmatpush3.bf16.msra.mxu1 %v4441_v16  ;;  %3082 = vmatpush1.bf16.msra.mxu0 %v4449_v22  ;;  %v2866_v16 = vld [vmem:[%s5300_s1 + $0x518] sm:$0x1] }
 0x43f   :  { %3038 = vmatprep.subr.bf16.mxu1 %v4442_v0  ;;  %3083 = vmatprep.subr.bf16.mxu0 %v4451_v24 }
 0x441   :  { %4283 = vmatmul.mubr.msk.bf16.vlgmr.msra.gmra.mxu1 %vm1933_vm2, %v2172_v17 }
 0x442   :  { %3039 = vmatpush1.bf16.msra.mxu1 %v4444_v15  ;;  %3084 = vmatpush1.bf16.msra.mxu0 %v4453_v23  ;;  %v2867_v15 = vunpack.c.l.bf16 %v2866_v16 }
 0x443   :  { %3040 = vmatprep.subr.bf16.mxu1 %v4446_v19  ;;  %3085 = vmatprep.subr.bf16.mxu0 %v4455_v27 }
 0x444   :  { %3062 = vmatprep.mubr.bf16.mxu1 %v4492_v31  ;;  %v2871_v24 = vrot.slane %v2867_v15, %v4615_v37  ;;  %v4460_v31 = vld [vmem:[%s5300_s1 + $0x440] sm:$0xff]  }
 0x446   :  { %3041 = vmatpush1.bf16.msra.mxu1 %v4448_v21  ;;  %3086 = vmatpush1.bf16.msra.mxu0 %v4457_v30 }
 0x447   :  { %3042 = vmatprep.subr.bf16.mxu1 %v4450_v12  ;;  %3952 = vmatprep.subr.bf16.mxu0 %v4459_v35 }
 0x44a   :  { %3043 = vmatpush1.bf16.msra.mxu1 %v4452_v25 }
 0x44b   :  { %3044 = vmatprep.subr.bf16.mxu1 %v4454_v26 }
 0x44e   :  { %3045 = vmatpush1.bf16.msra.mxu1 %v4456_v28 }
 0x44f   :  { %3930 = vmatprep.subr.bf16.mxu1 %v4458_v32  ;;  %v4461_v32 = vld [vmem:[%s5300_s1 + $0x4c0] sm:$0xff]  }
 0x4c1   :  { %v2307_v29 = vpop.f32.mrf.mxu1 }
 0x4c2   :  { %v2849_v51 = vsel %vm1933_vm2, %v2307_v29, 0.0  ;;  %v4462_v29 = vld [vmem:[%s5300_s1 + $0x478] sm:$0xff]  }
 0x4c3   :  { %v4200_v36 = vpop.f32.mrf.mxu1 }
 0x4c4   :  { %v4463_v36 = vld [vmem:[%s5300_s1 + $0x4f8] sm:$0xff]  }
 0x4c5   :  { %v2310_v39 = vpop.f32.mrf.mxu1 }
 0x4c6   :  { %v4464_v39 = vld [vmem:[%s5300_s1 + $0x438] sm:$0xff]  }
 0x4c7   :  { %v4201_v42 = vpop.f32.mrf.mxu1 }
 0x4c8   :  { %v4465_v42 = vld [vmem:[%s5300_s1 + $0x4b8] sm:$0xff]  }
 0x4c9   :  { %v2441_v44 = vpop.f32.mrf.mxu0 }
 0x4ca   :  { %v2852_v56 = vsel %vm1933_vm2, %v2441_v44, 0.0  ;;  %v4466_v44 = vld [vmem:[%s5300_s1 + $0x470] sm:$0xff]  }
 0x4cb   :  { %v4224_v45 = vpop.f32.mrf.mxu0 }
 0x4cc   :  { %v4467_v45 = vld [vmem:[%s5300_s1 + $0x4f0] sm:$0xff]  }
 0x4cd   :  { %v2444_v52 = vpop.f32.mrf.mxu0 }
 0x4ce   :  { %v4468_v52 = vld [vmem:[%s5300_s1 + $0x430] sm:$0xff]  }
 0x4cf   :  { %v4225_v38 = vpop.f32.mrf.mxu0 }
 0x4d0   :  { %v4469_v38 = vld [vmem:[%s5300_s1 + $0x4b0] sm:$0xff]  }
 0x4d1   :  { %v2374_v54 = vpop.f32.mrf.mxu1 }
 0x4d2   :  { %v2850_v57 = vsel %vm1933_vm2, %v2374_v54, 0.0  ;;  %v4470_v54 = vld [vmem:[%s5300_s1 + $0x468] sm:$0xff]  }
 0x4d3   :  { %v4212_v60 = vpop.f32.mrf.mxu1  ;;  %v2851_v55 = vadd.f32 %v2850_v57, %v2849_v51  ;;  %v4485_v57 = vld [vmem:[%s5300_s1 + $0x490] sm:$0xff]   ;;  %v4487_v51 = vld [vmem:[%s5300_s1 + $0x4c8] sm:$0xff]  }
 0x4d4   :  { %v4471_v60 = vld [vmem:[%s5300_s1 + $0x4e8] sm:$0xff]  }
 0x4d5   :  { %v2377_v3 = vpop.f32.mrf.mxu1  ;;  %v2853_v58 = vadd.f32 %v2852_v56, %v2851_v55  ;;  %v4488_v55 = vld [vmem:[%s5300_s1 + $0x408] sm:$0xff]  }
 0x4d6   :  { %v4472_v3 = vld [vmem:[%s5300_s1 + $0x428] sm:$0xff]  }
 0x4d7   :  { %v4213_v41 = vpop.f32.mrf.mxu1  ;;  %v3003_v56 = vld [vmem:[%s5300_s1 + $0x528] sm:$0x1] }
 0x4d8   :  { %v4473_v41 = vld [vmem:[%s5300_s1 + $0x4a8] sm:$0xff]  }
 0x4d9   :  { %v2575_v46 = vpop.f32.mrf.mxu0 }
 0x4da   :  { %v2856_v11 = vsel %vm1933_vm2, %v2575_v46, 0.0  ;;  %v4474_v46 = vld [vmem:[%s5300_s1 + $0x460] sm:$0xff]  }
 0x4db   :  { %v4248_v48 = vpop.f32.mrf.mxu0 }
 0x4dc   :  { %v4475_v48 = vld [vmem:[%s5300_s1 + $0x4e0] sm:$0xff]  }
 0x4dd   :  { %v2578_v2 = vpop.f32.mrf.mxu0 }
 0x4de   :  { %v4476_v2 = vld [vmem:[%s5300_s1 + $0x420] sm:$0xff]  }
 0x4df   :  { %v4249_v4 = vpop.f32.mrf.mxu0 }
 0x4e0   :  { %v4477_v4 = vld [vmem:[%s5300_s1 + $0x4a0] sm:$0xff]  }
 0x4e1   :  { %v2508_v43 = vpop.f32.mrf.mxu1 }
 0x4e2   :  { %v2854_v53 = vsel %vm1933_vm2, %v2508_v43, 0.0  ;;  %v4478_v43 = vld [vmem:[%s5300_s1 + $0x458] sm:$0xff]  }
 0x4e3   :  { %v4236_v62 = vpop.f32.mrf.mxu1  ;;  %v2855_v9 = vadd.f32 %v2854_v53, %v2853_v58  ;;  %v3004_v53 = vld [vmem:[%s5300_s1 + $0x530] sm:$0x1]  ;;  %v3006_v58 = vld [vmem:[%s5300_s1 + $0x540] sm:$0x1] }
 0x4e4   :  { %v4479_v62 = vld [vmem:[%s5300_s1 + $0x4d8] sm:$0xff]  }
 0x4e5   :  { %v2511_v50 = vpop.f32.mrf.mxu1  ;;  %v2857_v5 = vadd.f32 %v2856_v11, %v2855_v9  ;;  %v3010_v11 = vunpack.c.l.bf16 %v3006_v58 }
 0x4e6   :  { %v4480_v50 = vld [vmem:[%s5300_s1 + $0x418] sm:$0xff]  }
 0x4e7   :  { %v4237_v6 = vpop.f32.mrf.mxu1 }
 0x4e8   :  { %v4481_v6 = vld [vmem:[%s5300_s1 + $0x498] sm:$0xff]  }
 0x4e9   :  { %v2709_v7 = vpop.f32.mrf.mxu0 }
 0x4ea   :  { %v2860_v18 = vsel %vm1933_vm2, %v2709_v7, 0.0  ;;  %v4482_v7 = vld [vmem:[%s5300_s1 + $0x450] sm:$0xff]  }
 0x4eb   :  { %v4272_v40 = vpop.f32.mrf.mxu0 }
 0x4ec   :  { %v4483_v40 = vld [vmem:[%s5300_s1 + $0x4d0] sm:$0xff]  }
 0x4ed   :  { %v2712_v49 = vpop.f32.mrf.mxu0 }
 0x4ee   :  { %v4484_v49 = vld [vmem:[%s5300_s1 + $0x410] sm:$0xff]  }
 0x4ef   :  { %v4273_v47 = vpop.f32.mrf.mxu0 }
 0x4f0   :  { %v4486_v47 = vld [vmem:[%s5300_s1 + $0x448] sm:$0xff]  }
 0x4f1   :  { %v2642_v59 = vpop.f32.mrf.mxu1 }
 0x4f2   :  { %v2858_v61 = vsel %vm1933_vm2, %v2642_v59, 0.0  ;;  %v4489_v59 = vld [vmem:[%s5300_s1 + $0x488] sm:$0xff]  }
 0x4f3   :  { %v4260_v8 = vpop.f32.mrf.mxu1  ;;  %v2859_v17 = vadd.f32 %v2858_v61, %v2857_v5 }
 0x4f4   :  { %v3005_v8 = vld [vmem:[%s5300_s1 + $0x538] sm:$0x1] }
 0x4f5   :  { %v2645_v1 = vpop.f32.mrf.mxu1  ;;  %v2861_v20 = vadd.f32 %v2860_v18, %v2859_v17  ;;  %v3009_v9 = vunpack.c.l.bf16 %v3005_v8 }
 0x4f6   :  { %v3007_v1 = vunpack.c.l.bf16 %v3003_v56 }
 0x4f7   :  { %v4261_v10 = vpop.f32.mrf.mxu1  ;;  %v3022_v61 = vrot.slane %v3009_v9, %v4615_v37 }
 0x4f8   :  { %v3008_v10 = vunpack.c.l.bf16 %v3004_v53 }
 0x4f9   :  { %v2843_v14 = vpop.f32.mrf.mxu0 }
 0x4fa   :  { %v2864_v21 = vsel %vm1933_vm2, %v2843_v14, 0.0  ;;  %v3014_v14 = vrot.slane %v3007_v1, %v4615_v37  ;;  %v3018_v5 = vrot.slane %v3008_v10, %v4615_v37 }
 0x4fb   :  { %v4296_v63 = vpop.f32.mrf.mxu0 }
 0x4fc   :  { %v3026_v63 = vrot.slane %v3010_v11, %v4615_v37 }
 0x4fd   :  { %v2846_v0 = vpop.f32.mrf.mxu0 }
 0x4ff   :  { %v4297_v13 = vpop.f32.mrf.mxu0 }
 0x501   :  { %v2776_v19 = vpop.f32.mrf.mxu1 }
 0x502   :  { %v2862_v22 = vsel %vm1933_vm2, %v2776_v19, 0.0 }
 0x503   :  { %v2863_v12 = vadd.f32 %v2862_v22, %v2861_v20  ;;  %v4284_v25 = vpop.f32.mrf.mxu1 }
 0x505   :  { %v2865_v23 = vadd.f32 %v2864_v21, %v2863_v12  ;;  %v2779_v26 = vpop.f32.mrf.mxu1 }
 0x507   :  { %v2872_v27 = vadd.f32 %v2871_v24, %v2865_v23  ;;  %v4285_v28 = vpop.f32.mrf.mxu1 }
 0x509   :  { %v2873_v30 = vmax.f32 %v2872_v27, 0.0 }
 0x50b   :  { %v2874_v35 = vpack.c.bf16 %v2873_v30, %v2873_v30 }
 0x50d   :  { %3684 = vmatmul.mubr.msk.bf16.vlgmr.msra.gmra.mxu1 %vm1933_vm2, %v2874_v35  ;;  %3685 = vmatmul.mubr.msk.bf16.vlgmr.msra.gmra.mxu0 %vm1933_vm2, %v2874_v35  ;;  %v4493_v35 = vmov 6  }
 0x50e   :  { %3931 = vmatpush3.bf16.msra.mxu1 %v4460_v31  ;;  %3953 = vmatpush3.bf16.msra.mxu0 %v4461_v32 }
 0x50f   :  { %3932 = vmatprep.subr.bf16.mxu1 %v4462_v29  ;;  %3954 = vmatprep.subr.bf16.mxu0 %v4463_v36  ;;  %v3184_v29 = vld [vmem:[%s5300_s1 + $0x520] sm:$0x1] }
 0x510   :  { %4304 = vset.pattern.permute.xlu0 %v4493_v35  ;;  %v3185_v36 = vunpack.c.l.bf16 %v3184_v29 }
 0x512   :  { %3933 = vmatpush3.bf16.msra.mxu1 %v4464_v39  ;;  %3955 = vmatpush3.bf16.msra.mxu0 %v4465_v42  ;;  %v3465_v39 = vand.u32 127, %v62_v33 }
 0x513   :  { %3934 = vmatprep.subr.bf16.mxu1 %v4466_v44  ;;  %3956 = vmatprep.subr.bf16.mxu0 %v4467_v45  ;;  %v3189_v45 = vrot.slane %v3185_v36, %v4615_v37 }
 0x514   :  { %vm3467_vm6 = vcmp.lt.s32.totalorder %v3465_v39, 6 }
 0x515   :  { %vm3468_vm7 = vmand %vm3466_vm5, %vm3467_vm6 }
 0x516   :  { %3935 = vmatpush3.bf16.msra.mxu1 %v4468_v52  ;;  %3957 = vmatpush3.bf16.msra.mxu0 %v4469_v38 }
 0x517   :  { %3936 = vmatprep.subr.bf16.mxu1 %v4470_v54  ;;  %3958 = vmatprep.subr.bf16.mxu0 %v4471_v60 }
 0x51a   :  { %3937 = vmatpush3.bf16.msra.mxu1 %v4472_v3  ;;  %3959 = vmatpush3.bf16.msra.mxu0 %v4473_v41 }
 0x51b   :  { %3938 = vmatprep.subr.bf16.mxu1 %v4474_v46  ;;  %3960 = vmatprep.subr.bf16.mxu0 %v4475_v48 }
 0x51e   :  { %3939 = vmatpush3.bf16.msra.mxu1 %v4476_v2  ;;  %3961 = vmatpush3.bf16.msra.mxu0 %v4477_v4 }
 0x51f   :  { %3940 = vmatprep.subr.bf16.mxu1 %v4478_v43  ;;  %3962 = vmatprep.subr.bf16.mxu0 %v4479_v62 }
 0x522   :  { %3941 = vmatpush3.bf16.msra.mxu1 %v4480_v50  ;;  %3963 = vmatpush3.bf16.msra.mxu0 %v4481_v6 }
 0x523   :  { %3942 = vmatprep.subr.bf16.mxu1 %v4482_v7  ;;  %3964 = vmatprep.subr.bf16.mxu0 %v4483_v40 }
 0x526   :  { %3943 = vmatpush3.bf16.msra.mxu1 %v4484_v49  ;;  %3965 = vmatpush3.bf16.msra.mxu0 %v4485_v57 }
 0x527   :  { %3944 = vmatprep.subr.bf16.mxu1 %v4486_v47  ;;  %3966 = vmatprep.subr.bf16.mxu0 %v4487_v51 }
 0x52a   :  { %3945 = vmatpush3.bf16.msra.mxu1 %v4488_v55  ;;  %3967 = vmatpush3.bf16.msra.mxu0 %v4489_v59 }
 0x5cd   :  { %v3064_v16 = vpop.f32.mrf.mxu1  ;;  %v3105_v17 = vpop.f32.mrf.mxu0 }
 0x5ce   :  { %v3065_v0 = vadd.f32 %v3064_v16, %v3014_v14  ;;  %v3106_v18 = vadd.f32 %v3105_v17, %v3022_v61 }
 0x5cf   :  { %v3066_v15 = vpop.f32.mrf.mxu1  ;;  %v3107_v13 = vpop.f32.mrf.mxu0 }
 0x5d0   :  { %v3067_v19 = vadd.f32 %v3066_v15, %v3018_v5  ;;  %v3108_v20 = vadd.f32 %v3107_v13, %v3026_v63  ;;  %v3112_v21 = vmax.f32 %v3065_v0, 0.0  ;;  %v3114_v22 = vmax.f32 %v3106_v18, 0.0 }
 0x5d1   :  { %v3068_v12 = vpop.f32.mrf.mxu1  ;;  %v3109_v24 = vpop.f32.mrf.mxu0 }
 0x5d2   :  { %v3113_v25 = vmax.f32 %v3067_v19, 0.0  ;;  %v3115_v23 = vmax.f32 %v3108_v20, 0.0  ;;  %v3116_v31 = vpack.c.bf16 %v3112_v21, %v3112_v21  ;;  %v3118_v32 = vpack.c.bf16 %v3114_v22, %v3114_v22 }
 0x5d3   :  { %v3069_v26 = vpop.f32.mrf.mxu1  ;;  %v3110_v27 = vpop.f32.mrf.mxu0 }
 0x5d4   :  { %v3117_v28 = vpack.c.bf16 %v3113_v25, %v3113_v25  ;;  %v3119_v30 = vpack.c.bf16 %v3115_v23, %v3115_v23 }
 0x5d6   :  { %3414 = vmatprep.mubr.bf16.mxu1 %v3117_v28  ;;  %3454 = vmatprep.mubr.bf16.mxu0 %v3119_v30 }
 0x5d7   :  { %3415 = vmatmul.mubr.bf16.vlgmr.msra.gmra.mxu1 %v3116_v31  ;;  %3455 = vmatmul.mubr.bf16.vlgmr.msra.gmra.mxu0 %v3118_v32 }
 0x697   :  { %v3946_v42 = vpop.f32.mrf.mxu1  ;;  %v3968_v44 = vpop.f32.mrf.mxu0 }
 0x699   :  { %v3947_v52 = vpop.f32.mrf.mxu1  ;;  %v3969_v38 = vpop.f32.mrf.mxu0 }
 0x69a   :  { %v3948_v54 = vadd.f32 %v3947_v52, %v3946_v42  ;;  %v3970_v46 = vadd.f32 %v3969_v38, %v3968_v44 }
 0x69b   :  { %v3949_v60 = vpop.f32.mrf.mxu1  ;;  %v3971_v3 = vpop.f32.mrf.mxu0 }
 0x69c   :  { %v3417_v41 = vadd.f32 %v3948_v54, %v3189_v45 }
 0x69d   :  { %v3950_v48 = vpop.f32.mrf.mxu1  ;;  %v3972_v2 = vpop.f32.mrf.mxu0 }
 0x69e   :  { %v3457_v4 = vadd.f32 %v3970_v46, %v3417_v41 }
 0x6a0   :  { %v3469_v43 = vsel %vm3468_vm7, %v3457_v4, 0.0 }
 0x6a1   :  { %3470 = vadd.xlane.f32.xlu0 %v3469_v43 }
 0x6b7   :  { %3482 = vperm.xlu0 %4304, %v3457_v4  }
 0x72a   :  { %v3471_v33 = vpop.xlane.xlu0 %3470 }
 0x72b   :  { %v3472_v62 = vrot.slane %v3471_v33, 4 }
 0x72d   :  { %v3473_v37 = vadd.f32 %v3472_v62, %v3471_v33 }
 0x72f   :  { %v3474_v50 = vrot.slane %v3473_v37, 2 }
 0x731   :  { %v3475_v6 = vadd.f32 %v3474_v50, %v3473_v37 }
 0x732   :  { %v3483_v34 = vpop.permute.xlu0 %3482 }
 0x733   :  { %v3476_v7 = vrot.slane %v3475_v6, 1  ;;  %v3485_v49 = vadd.f32 %v3483_v34, %v3457_v4 }
 0x735   :  { %v3477_v40 = vadd.f32 %v3476_v7, %v3475_v6 }
 0x737   :  { %4298 = vpush %v3477_v40 }
 0x768   :  { %s4299_s1 = spop %4298 }
 0x769   :  { %s3479_s4 = smul.f32 0.083333336, %s4299_s1 }
 0x76b   :  { %v3486_v57 = vstv %s3479_s4 }
 0x76c   :  { %v3487_v47 = vsub.f32 %v3485_v49, %v3486_v57 }
 0x76e   :  { %3488 = vst [vmem:[%s5302_s2] sm:$0xff] %v3487_v47 }

</bundles_post_ra>
